<compile_context>
chip_gen: v5e
topology: v5e:2x2
jax: 0.10.0
libtpu: 0.0.40
codegen_flags: <defaults>
</compile_context>

<pallas_src>
import functools
import numpy as np
import jax
import jax.numpy as jnp
from jax.experimental import pallas as pl
from jax.experimental.pallas import tpu as pltpu


# ----------------------- deterministic parameter setup (mirrors __init__) ----------
def _round_up(x, m):
    return (x + m - 1) // m * m


def _hann_periodic(win_length):
    n = np.arange(win_length)
    return 0.5 - 0.5 * np.cos(2.0 * np.pi * n / win_length)


def _pad_center(w, size):
    pad = (size - len(w)) // 2
    return np.pad(w, (pad, size - len(w) - pad))


def make_stft_params(filter_length, hop_length, win_length):
    cutoff = filter_length // 2 + 1
    fourier_basis = np.fft.fft(np.eye(filter_length))
    fb = np.vstack([np.real(fourier_basis[:cutoff]),
                    np.imag(fourier_basis[:cutoff])])                 # (2C, L)
    scale = filter_length / hop_length
    inv_b = np.linalg.pinv(scale * fb).T                              # (2C, L)
    fft_window = _pad_center(_hann_periodic(win_length), filter_length)
    forward_basis = (fb * fft_window[None, :]).astype(np.float32)
    inverse_basis = (inv_b * fft_window[None, :]).astype(np.float32)
    return forward_basis, inverse_basis, fft_window.astype(np.float32)


def window_sumsquare_np(fft_window_padded, n_frames, hop_length, n_fft):
    # librosa window_sumsquare with norm=None
    n = n_fft + hop_length * (n_frames - 1)
    x = np.zeros(n, dtype=np.float32)
    win_sq = fft_window_padded.astype(np.float32) ** 2
    for i in range(n_frames):
        sample = i * hop_length
        x[sample:min(n, sample + n_fft)] += win_sq[:max(0, min(n_fft, n - sample))]
    return x


# -------------------------------------- kernel -------------------------------------
def stft_kernel(sig_ref, fwdb_ref, invb_ref, invws_ref,
                spec_ref, mag_ref, recon_ref,
                *, hop_length, n_taps, cutoff_pad, n_frames):
    hop, R = hop_length, n_taps
    sig = sig_ref[0].astype(jnp.float32)                              # (hop, F_pad)
    f_pad = sig.shape[-1]

    # frame-validity mask on the lane (frame/chunk) axis: partial frames beyond
    # n_frames (and roll wrap-around junk) must contribute exact zeros so they
    # cannot pollute the overlap-add tail.
    lane = jax.lax.broadcasted_iota(jnp.int32, sig.shape, 1)
    valid = lane < n_frames

    # ---------------- forward transform: spec^T = sum_c fwdb_c @ frames_c ----------
    # frames_c[r, f] = padded_signal[(f + c) * hop + r] == roll(sig, -c) on lanes,
    # so the im2col never exists; each tap feeds the MXU directly (bf16 x bf16 -> f32).
    spec = None
    for c in range(R):
        s_c = sig if c == 0 else pltpu.roll(sig, shift=f_pad - c, axis=1)   # roll by -c
        s_c = jnp.where(valid, s_c, 0.0).astype(jnp.bfloat16)
        part = jnp.dot(fwdb_ref[c], s_c, preferred_element_type=jnp.float32)
        spec = part if spec is None else spec + part                  # (2*C_pad, F_pad)
    spec_ref[0] = spec                                                # lane-dense store

    real = spec[:cutoff_pad, :]                                       # 128-aligned slices
    imag = spec[cutoff_pad:, :]
    mag_ref[0] = jnp.sqrt(real * real + imag * imag)                  # lane-dense store

    # ---------------- inverse transform + overlap-add (value level, lane dense) ----
    # recombine_magnitude_phase = [mag*cos(phase), mag*sin(phase)] == [real, imag]
    # exactly, so the spectrum goes straight into the per-tap inverse matmuls.
    spec_bf = spec.astype(jnp.bfloat16)
    y = None
    for c in range(R):
        fo_c = jnp.dot(invb_ref[c], spec_bf,
                       preferred_element_type=jnp.float32)            # (hop, F_pad)
        if c:                                                          # chunk offset +c
            fo_c = pltpu.roll(fo_c, shift=c, axis=1)
        y = fo_c if y is None else y + fo_c
    # window-sumsquare normalization (L/hop scale folded in host-side), single store.
    recon_ref[0] = y * invws_ref[...]


# ------------------------------------- wrapper -------------------------------------
def stft_forward(x, forward_basis, inverse_basis, inv_window_sum_scaled,
                 filter_length, hop_length):
    B, num_samples = x.shape
    L, hop = filter_length, hop_length
    assert L % hop == 0, "chunked framing / overlap-add requires hop_length | filter_length"
    R = L // hop
    cutoff = L // 2 + 1
    half = L // 2

    # reflect pad (glue) and lay the signal out as hop-sized chunks on the lane axis.
    padded = jnp.pad(x, ((0, 0), (half, half)), mode='reflect')
    n_sig = num_samples + 2 * half
    n_frames = (n_sig - L) // hop + 1
    n_chunks = n_frames + R - 1                                       # output chunks
    out_len = hop * n_chunks                                          # == L + hop*(n_frames-1)

    # lane / MXU friendly padded sizes: frame axis on lanes, multiple of 256 for the
    # 2x256x256 MXUs on v6e/v7x (128 would suffice on v5e).  C_pad over-padding of the
    # cutoff to a 128 lane boundary is accepted (zero columns cost only padding work).
    C_pad = _round_up(cutoff, 128)
    two_c_pad = 2 * C_pad
    F_pad = _round_up(max(n_chunks, -(-n_sig // hop)), 256)

    sig = jnp.pad(padded, ((0, 0), (0, F_pad * hop - n_sig)))
    sig_t = jnp.transpose(sig.reshape(B, F_pad, hop), (0, 2, 1))      # (B, hop, F_pad)
    sig_t = sig_t.astype(jnp.bfloat16)                                # bf16 input stream

    # forward basis split per hop-chunk tap: fwdb_split[c, k, r] = basis[k, c*hop + r]
    fwdb_t = np.zeros((two_c_pad, L), np.float32)
    fwdb_t[:cutoff] = forward_basis[:cutoff]
    fwdb_t[C_pad:C_pad + cutoff] = forward_basis[cutoff:]
    fwdb_split = np.ascontiguousarray(
        fwdb_t.reshape(two_c_pad, R, hop).transpose(1, 0, 2))         # (R, 2*C_pad, hop)

    # inverse basis split per hop-chunk tap: invb_split[c, r, k] = inv_basis[k, c*hop + r]
    invb_t = np.zeros((L, two_c_pad), np.float32)
    invb_t[:, :cutoff] = inverse_basis[:cutoff].T
    invb_t[:, C_pad:C_pad + cutoff] = inverse_basis[cutoff:].T
    invb_split = invb_t.reshape(R, hop, two_c_pad)                    # (R, hop, 2*C_pad)

    # window-sum normalization (scale folded in), chunk-transposed lane-dense layout.
    invws_full = np.ones((F_pad * hop,), np.float32)
    invws_full[:out_len] = inv_window_sum_scaled
    invws_t = np.ascontiguousarray(invws_full.reshape(F_pad, hop).T)  # (hop, F_pad)

    kernel = functools.partial(stft_kernel, hop_length=hop, n_taps=R,
                               cutoff_pad=C_pad, n_frames=n_frames)

    # explicit scoped-VMEM budget from the actual block sizes (double-buffered I/O
    # blocks + in-kernel intermediates + headroom), per perf review.
    io_bytes = (hop * F_pad * 2 + R * two_c_pad * hop * 2 + R * hop * two_c_pad * 2
                + hop * F_pad * 4 + two_c_pad * F_pad * 4 + C_pad * F_pad * 4
                + hop * F_pad * 4)
    interm_bytes = (two_c_pad + 8 * hop) * F_pad * 4
    vmem_limit = int(min(64 * 1024 * 1024, 2 * io_bytes + interm_bytes + (4 << 20)))

    spec, mag, recon = pl.pallas_call(
        kernel,
        out_shape=(jax.ShapeDtypeStruct((B, two_c_pad, F_pad), jnp.float32),
                   jax.ShapeDtypeStruct((B, C_pad, F_pad), jnp.float32),
                   jax.ShapeDtypeStruct((B, hop, F_pad), jnp.float32)),
        grid=(B,),
        in_specs=[
            pl.BlockSpec((1, hop, F_pad), lambda b: (b, 0, 0)),
            # grid-invariant constants (basis / norm); at production basis sizes these
            # would be single-buffered to halve their VMEM footprint.
            pl.BlockSpec((R, two_c_pad, hop), lambda b: (0, 0, 0)),
            pl.BlockSpec((R, hop, two_c_pad), lambda b: (0, 0, 0)),
            pl.BlockSpec((hop, F_pad), lambda b: (0, 0)),
        ],
        out_specs=(
            pl.BlockSpec((1, two_c_pad, F_pad), lambda b: (b, 0, 0)),
            pl.BlockSpec((1, C_pad, F_pad), lambda b: (b, 0, 0)),
            pl.BlockSpec((1, hop, F_pad), lambda b: (b, 0, 0)),
        ),
        compiler_params=pltpu.CompilerParams(
            dimension_semantics=("parallel",),      # B=2 -> both v7x TensorCores busy
            vmem_limit_bytes=vmem_limit),
    )(sig_t, jnp.asarray(fwdb_split, jnp.bfloat16),
      jnp.asarray(invb_split, jnp.bfloat16), jnp.asarray(invws_t))
    # NOTE: at production sizes (L=1024, thousands of frames) add a second grid axis
    # tiling F_pad in 256-frame multiples, carrying the (R-1)-chunk overlap-add halo
    # in the resident recon block, to stay inside v7x's 64 MiB VMEM.

    # crop the padded, aligned kernel outputs back to the PyTorch convention (glue).
    recon_sig = jnp.transpose(recon, (0, 2, 1)).reshape(B, F_pad * hop)   # small array
    reconstruction = recon_sig[:, half:half + (out_len - 2 * half)][:, None, :]  # (B,1,T)
    magnitude = mag[:, :cutoff, :n_frames]                            # already (B, C, F)
    real_p = spec[:, :cutoff, :n_frames]
    imag_p = spec[:, C_pad:C_pad + cutoff, :n_frames]
    # TODO(synk): atan2 kept in plain JAX glue (Mosaic atan2 lowering availability varies).
    phase = jnp.arctan2(imag_p, real_p)
    return reconstruction, magnitude, phase


# --------------------------------------- main --------------------------------------
if __name__ == "__main__":
    filter_length, hop_length, win_length = 16, 4, 16
    B, num_samples = 2, 64

    fwd_b, inv_b, fft_window = make_stft_params(filter_length, hop_length, win_length)

    key = jax.random.PRNGKey(0)
    x = jax.random.normal(key, (B, num_samples), dtype=jnp.float32)

    half = filter_length // 2
    n_frames = (num_samples + 2 * half - filter_length) // hop_length + 1
    ws = window_sumsquare_np(fft_window, n_frames, hop_length, filter_length)
    tiny = np.finfo(np.float32).tiny
    scale = filter_length / hop_length
    # fold the L/hop scale into the precomputed normalization (saves a VPU multiply)
    inv_ws_scaled = np.where(ws > tiny, scale / ws, scale).astype(np.float32)

    recon, magnitude, phase = stft_forward(x, fwd_b, inv_b, inv_ws_scaled,
                                           filter_length, hop_length)
    recon = jax.block_until_ready(recon)
    jax.block_until_ready((magnitude, phase))

    # ---- silent numpy reference check (operands rounded to bf16 to mirror the MXU) ----
    def _bf16(a):
        return np.asarray(jnp.asarray(np.asarray(a, np.float32),
                                      dtype=jnp.bfloat16)).astype(np.float64)

    xn = np.asarray(x, dtype=np.float64)
    padded_np = np.pad(xn, ((0, 0), (half, half)), mode='reflect')
    idx = hop_length * np.arange(n_frames)[:, None] + np.arange(filter_length)[None, :]
    frames_np = _bf16(padded_np[:, idx])                              # (B, F, L)
    spec_np = np.einsum('bfl,kl->bkf', frames_np, _bf16(fwd_b))       # (B, 2C, F)
    C = filter_length // 2 + 1
    real_np, imag_np = spec_np[:, :C], spec_np[:, C:]
    mag_np = np.sqrt(real_np ** 2 + imag_np ** 2)
    # recombine_magnitude_phase == [real, imag]; the kernel feeds bf16(spec) to the MXU
    spec_bf = _bf16(spec_np)
    inv_bf = _bf16(inv_b)
    out_len = filter_length + hop_length * (n_frames - 1)
    acc = np.zeros((B, out_len))
    for f in range(n_frames):
        acc[:, f * hop_length:f * hop_length + filter_length] += spec_bf[:, :, f] @ inv_bf
    acc = acc * inv_ws_scaled[None, :]
    ref_recon = acc[:, half:out_len - half][:, None, :]

    # tolerances reflect bf16 MXU operands (f32 accumulation), per perf review.
    assert np.allclose(np.asarray(magnitude), mag_np, atol=2e-2, rtol=2e-2), "magnitude mismatch"
    assert np.allclose(np.asarray(recon), ref_recon, atol=2e-2, rtol=2e-2), "reconstruction mismatch"

    print("KERNEL_OK")
</pallas_src>

<mosaic_0001>
module attributes {stable_mosaic.version = 11 : i64} {
  func.func @stft_kernel(%arg0: i32, %arg1: memref<1x4x256xbf16, #tpu.memory_space<vmem>>, %arg2: memref<4x256x4xbf16, #tpu.memory_space<vmem>>, %arg3: memref<4x4x256xbf16, #tpu.memory_space<vmem>>, %arg4: memref<4x256xf32, #tpu.memory_space<vmem>>, %arg5: memref<1x256x256xf32, #tpu.memory_space<vmem>>, %arg6: memref<1x128x256xf32, #tpu.memory_space<vmem>>, %arg7: memref<1x4x256xf32, #tpu.memory_space<vmem>>) attributes {dimension_semantics = [#tpu.dimension_semantics<parallel>], iteration_bounds = array<i64: 2>, scalar_prefetch = 0 : i64, scratch_operands = 0 : i64, tpu.core_type = #tpu.core_type<tc>, window_params = [{transform_indices = @transform_0, window_bounds = array<i64: 1, 4, 256>}, {pipeline_mode = #tpu.pipeline_mode<synchronous>, transform_indices = @transform_1, window_bounds = array<i64: 4, 256, 4>}, {pipeline_mode = #tpu.pipeline_mode<synchronous>, transform_indices = @transform_2, window_bounds = array<i64: 4, 4, 256>}, {pipeline_mode = #tpu.pipeline_mode<synchronous>, transform_indices = @transform_3, window_bounds = array<i64: 4, 256>}, {transform_indices = @transform_4, window_bounds = array<i64: 1, 256, 256>}, {transform_indices = @transform_5, window_bounds = array<i64: 1, 128, 256>}, {transform_indices = @transform_6, window_bounds = array<i64: 1, 4, 256>}]} {
    %c0 = arith.constant 0 : index
    %c0_0 = arith.constant 0 : index
    %c0_1 = arith.constant 0 : index
    %0 = vector.load %arg1[%c0, %c0_0, %c0_1] : memref<1x4x256xbf16, #tpu.memory_space<vmem>>, vector<1x4x256xbf16>
    %1 = vector.shape_cast %0 : vector<1x4x256xbf16> to vector<4x256xbf16>
    %2 = arith.extf %1 : vector<4x256xbf16> to vector<4x256xf32>
    %3 = tpu.iota {dimensions = array<i32: 1>} : vector<4x256xi32>
    %c17_i32 = arith.constant 17 : i32
    %4 = vector.broadcast %c17_i32 : i32 to vector<4x256xi32>
    %5 = arith.cmpi slt, %3, %4 : vector<4x256xi32>
    %cst = arith.constant 0.000000e+00 : f32
    %6 = vector.broadcast %cst : f32 to vector<4x256xf32>
    %7 = arith.select %5, %2, %6 : vector<4x256xi1>, vector<4x256xf32>
    %8 = arith.truncf %7 : vector<4x256xf32> to vector<4x256xbf16>
    %c0_2 = arith.constant 0 : index
    %c0_3 = arith.constant 0 : index
    %c0_4 = arith.constant 0 : index
    %9 = vector.load %arg2[%c0_2, %c0_3, %c0_4] : memref<4x256x4xbf16, #tpu.memory_space<vmem>>, vector<1x256x4xbf16>
    %10 = vector.shape_cast %9 : vector<1x256x4xbf16> to vector<256x4xbf16>
    %cst_5 = arith.constant dense<0.000000e+00> : vector<256x256xf32>
    %11 = tpu.matmul %10, %8, %cst_5 {dimension_numbers = #tpu.dot_dimension_numbers<[1], [0], [0], [1], [0, 0, 1, 1], [], []>} : vector<256x4xbf16>, vector<4x256xbf16>, vector<256x256xf32> -> vector<256x256xf32>
    %c255_i32 = arith.constant 255 : i32
    %12 = tpu.dynamic_rotate %2 by %c255_i32 dim 1 : vector<4x256xf32>, i32 -> vector<4x256xf32>
    %cst_6 = arith.constant 0.000000e+00 : f32
    %13 = vector.broadcast %cst_6 : f32 to vector<4x256xf32>
    %14 = arith.select %5, %12, %13 : vector<4x256xi1>, vector<4x256xf32>
    %15 = arith.truncf %14 : vector<4x256xf32> to vector<4x256xbf16>
    %c1 = arith.constant 1 : index
    %c0_7 = arith.constant 0 : index
    %c0_8 = arith.constant 0 : index
    %16 = vector.load %arg2[%c1, %c0_7, %c0_8] : memref<4x256x4xbf16, #tpu.memory_space<vmem>>, vector<1x256x4xbf16>
    %17 = vector.shape_cast %16 : vector<1x256x4xbf16> to vector<256x4xbf16>
    %cst_9 = arith.constant dense<0.000000e+00> : vector<256x256xf32>
    %18 = tpu.matmul %17, %15, %cst_9 {dimension_numbers = #tpu.dot_dimension_numbers<[1], [0], [0], [1], [0, 0, 1, 1], [], []>} : vector<256x4xbf16>, vector<4x256xbf16>, vector<256x256xf32> -> vector<256x256xf32>
    %19 = arith.addf %11, %18 : vector<256x256xf32>
    %c254_i32 = arith.constant 254 : i32
    %20 = tpu.dynamic_rotate %2 by %c254_i32 dim 1 : vector<4x256xf32>, i32 -> vector<4x256xf32>
    %cst_10 = arith.constant 0.000000e+00 : f32
    %21 = vector.broadcast %cst_10 : f32 to vector<4x256xf32>
    %22 = arith.select %5, %20, %21 : vector<4x256xi1>, vector<4x256xf32>
    %23 = arith.truncf %22 : vector<4x256xf32> to vector<4x256xbf16>
    %c2 = arith.constant 2 : index
    %c0_11 = arith.constant 0 : index
    %c0_12 = arith.constant 0 : index
    %24 = vector.load %arg2[%c2, %c0_11, %c0_12] : memref<4x256x4xbf16, #tpu.memory_space<vmem>>, vector<1x256x4xbf16>
    %25 = vector.shape_cast %24 : vector<1x256x4xbf16> to vector<256x4xbf16>
    %cst_13 = arith.constant dense<0.000000e+00> : vector<256x256xf32>
    %26 = tpu.matmul %25, %23, %cst_13 {dimension_numbers = #tpu.dot_dimension_numbers<[1], [0], [0], [1], [0, 0, 1, 1], [], []>} : vector<256x4xbf16>, vector<4x256xbf16>, vector<256x256xf32> -> vector<256x256xf32>
    %27 = arith.addf %19, %26 : vector<256x256xf32>
    %c253_i32 = arith.constant 253 : i32
    %28 = tpu.dynamic_rotate %2 by %c253_i32 dim 1 : vector<4x256xf32>, i32 -> vector<4x256xf32>
    %cst_14 = arith.constant 0.000000e+00 : f32
    %29 = vector.broadcast %cst_14 : f32 to vector<4x256xf32>
    %30 = arith.select %5, %28, %29 : vector<4x256xi1>, vector<4x256xf32>
    %31 = arith.truncf %30 : vector<4x256xf32> to vector<4x256xbf16>
    %c3 = arith.constant 3 : index
    %c0_15 = arith.constant 0 : index
    %c0_16 = arith.constant 0 : index
    %32 = vector.load %arg2[%c3, %c0_15, %c0_16] : memref<4x256x4xbf16, #tpu.memory_space<vmem>>, vector<1x256x4xbf16>
    %33 = vector.shape_cast %32 : vector<1x256x4xbf16> to vector<256x4xbf16>
    %cst_17 = arith.constant dense<0.000000e+00> : vector<256x256xf32>
    %34 = tpu.matmul %33, %31, %cst_17 {dimension_numbers = #tpu.dot_dimension_numbers<[1], [0], [0], [1], [0, 0, 1, 1], [], []>} : vector<256x4xbf16>, vector<4x256xbf16>, vector<256x256xf32> -> vector<256x256xf32>
    %35 = arith.addf %27, %34 : vector<256x256xf32>
    %c0_18 = arith.constant 0 : index
    %c0_19 = arith.constant 0 : index
    %c0_20 = arith.constant 0 : index
    %36 = vector.load %arg5[%c0_18, %c0_19, %c0_20] : memref<1x256x256xf32, #tpu.memory_space<vmem>>, vector<1x256x256xf32>
    %37 = vector.shape_cast %36 : vector<1x256x256xf32> to vector<256x256xf32>
    %38 = vector.shape_cast %35 : vector<256x256xf32> to vector<1x256x256xf32>
    tpu.vector_store %arg5[%c0_18, %c0_19, %c0_20], %38 {strides = array<i32>} : memref<1x256x256xf32, #tpu.memory_space<vmem>>, vector<1x256x256xf32>,
    %39 = vector.extract_strided_slice %35 {offsets = [0, 0], sizes = [128, 256], strides = [1, 1]} : vector<256x256xf32> to vector<128x256xf32>
    %40 = vector.extract_strided_slice %35 {offsets = [128, 0], sizes = [128, 256], strides = [1, 1]} : vector<256x256xf32> to vector<128x256xf32>
    %41 = arith.mulf %39, %39 : vector<128x256xf32>
    %42 = arith.mulf %40, %40 : vector<128x256xf32>
    %43 = arith.addf %41, %42 : vector<128x256xf32>
    %44 = math.sqrt %43 : vector<128x256xf32>
    %c0_21 = arith.constant 0 : index
    %c0_22 = arith.constant 0 : index
    %c0_23 = arith.constant 0 : index
    %45 = vector.load %arg6[%c0_21, %c0_22, %c0_23] : memref<1x128x256xf32, #tpu.memory_space<vmem>>, vector<1x128x256xf32>
    %46 = vector.shape_cast %45 : vector<1x128x256xf32> to vector<128x256xf32>
    %47 = vector.shape_cast %44 : vector<128x256xf32> to vector<1x128x256xf32>
    tpu.vector_store %arg6[%c0_21, %c0_22, %c0_23], %47 {strides = array<i32>} : memref<1x128x256xf32, #tpu.memory_space<vmem>>, vector<1x128x256xf32>,
    %48 = arith.truncf %35 : vector<256x256xf32> to vector<256x256xbf16>
    %c0_24 = arith.constant 0 : index
    %c0_25 = arith.constant 0 : index
    %c0_26 = arith.constant 0 : index
    %49 = vector.load %arg3[%c0_24, %c0_25, %c0_26] : memref<4x4x256xbf16, #tpu.memory_space<vmem>>, vector<1x4x256xbf16>
    %50 = vector.shape_cast %49 : vector<1x4x256xbf16> to vector<4x256xbf16>
    %cst_27 = arith.constant dense<0.000000e+00> : vector<4x256xf32>
    %51 = tpu.matmul %50, %48, %cst_27 {dimension_numbers = #tpu.dot_dimension_numbers<[1], [0], [0], [1], [0, 0, 1, 1], [], []>} : vector<4x256xbf16>, vector<256x256xbf16>, vector<4x256xf32> -> vector<4x256xf32>
    %c1_28 = arith.constant 1 : index
    %c0_29 = arith.constant 0 : index
    %c0_30 = arith.constant 0 : index
    %52 = vector.load %arg3[%c1_28, %c0_29, %c0_30] : memref<4x4x256xbf16, #tpu.memory_space<vmem>>, vector<1x4x256xbf16>
    %53 = vector.shape_cast %52 : vector<1x4x256xbf16> to vector<4x256xbf16>
    %cst_31 = arith.constant dense<0.000000e+00> : vector<4x256xf32>
    %54 = tpu.matmul %53, %48, %cst_31 {dimension_numbers = #tpu.dot_dimension_numbers<[1], [0], [0], [1], [0, 0, 1, 1], [], []>} : vector<4x256xbf16>, vector<256x256xbf16>, vector<4x256xf32> -> vector<4x256xf32>
    %c1_i32 = arith.constant 1 : i32
    %55 = tpu.dynamic_rotate %54 by %c1_i32 dim 1 : vector<4x256xf32>, i32 -> vector<4x256xf32>
    %56 = arith.addf %51, %55 : vector<4x256xf32>
    %c2_32 = arith.constant 2 : index
    %c0_33 = arith.constant 0 : index
    %c0_34 = arith.constant 0 : index
    %57 = vector.load %arg3[%c2_32, %c0_33, %c0_34] : memref<4x4x256xbf16, #tpu.memory_space<vmem>>, vector<1x4x256xbf16>
    %58 = vector.shape_cast %57 : vector<1x4x256xbf16> to vector<4x256xbf16>
    %cst_35 = arith.constant dense<0.000000e+00> : vector<4x256xf32>
    %59 = tpu.matmul %58, %48, %cst_35 {dimension_numbers = #tpu.dot_dimension_numbers<[1], [0], [0], [1], [0, 0, 1, 1], [], []>} : vector<4x256xbf16>, vector<256x256xbf16>, vector<4x256xf32> -> vector<4x256xf32>
    %c2_i32 = arith.constant 2 : i32
    %60 = tpu.dynamic_rotate %59 by %c2_i32 dim 1 : vector<4x256xf32>, i32 -> vector<4x256xf32>
    %61 = arith.addf %56, %60 : vector<4x256xf32>
    %c3_36 = arith.constant 3 : index
    %c0_37 = arith.constant 0 : index
    %c0_38 = arith.constant 0 : index
    %62 = vector.load %arg3[%c3_36, %c0_37, %c0_38] : memref<4x4x256xbf16, #tpu.memory_space<vmem>>, vector<1x4x256xbf16>
    %63 = vector.shape_cast %62 : vector<1x4x256xbf16> to vector<4x256xbf16>
    %cst_39 = arith.constant dense<0.000000e+00> : vector<4x256xf32>
    %64 = tpu.matmul %63, %48, %cst_39 {dimension_numbers = #tpu.dot_dimension_numbers<[1], [0], [0], [1], [0, 0, 1, 1], [], []>} : vector<4x256xbf16>, vector<256x256xbf16>, vector<4x256xf32> -> vector<4x256xf32>
    %c3_i32 = arith.constant 3 : i32
    %65 = tpu.dynamic_rotate %64 by %c3_i32 dim 1 : vector<4x256xf32>, i32 -> vector<4x256xf32>
    %66 = arith.addf %61, %65 : vector<4x256xf32>
    %c0_40 = arith.constant 0 : index
    %c0_41 = arith.constant 0 : index
    %67 = vector.load %arg4[%c0_40, %c0_41] : memref<4x256xf32, #tpu.memory_space<vmem>>, vector<4x256xf32>
    %68 = arith.mulf %66, %67 : vector<4x256xf32>
    %c0_42 = arith.constant 0 : index
    %c0_43 = arith.constant 0 : index
    %c0_44 = arith.constant 0 : index
    %69 = vector.load %arg7[%c0_42, %c0_43, %c0_44] : memref<1x4x256xf32, #tpu.memory_space<vmem>>, vector<1x4x256xf32>
    %70 = vector.shape_cast %69 : vector<1x4x256xf32> to vector<4x256xf32>
    %71 = vector.shape_cast %68 : vector<4x256xf32> to vector<1x4x256xf32>
    tpu.vector_store %arg7[%c0_42, %c0_43, %c0_44], %71 {strides = array<i32>} : memref<1x4x256xf32, #tpu.memory_space<vmem>>, vector<1x4x256xf32>,
    return
  }
  func.func @transform_0(%arg0: i32) -> (i32, i32, i32) {
    %c0_i32 = arith.constant 0 : i32
    %c0_i32_0 = arith.constant 0 : i32
    %c0_i32_1 = arith.constant 0 : i32
    return %arg0, %c0_i32, %c0_i32_0 : i32, i32, i32
  }
  func.func @transform_1(%arg0: i32) -> (i32, i32, i32) {
    %c0_i32 = arith.constant 0 : i32
    %c0_i32_0 = arith.constant 0 : i32
    %c0_i32_1 = arith.constant 0 : i32
    %c0_i32_2 = arith.constant 0 : i32
    return %c0_i32, %c0_i32_0, %c0_i32_1 : i32, i32, i32
  }
  func.func @transform_2(%arg0: i32) -> (i32, i32, i32) {
    %c0_i32 = arith.constant 0 : i32
    %c0_i32_0 = arith.constant 0 : i32
    %c0_i32_1 = arith.constant 0 : i32
    %c0_i32_2 = arith.constant 0 : i32
    return %c0_i32, %c0_i32_0, %c0_i32_1 : i32, i32, i32
  }
  func.func @transform_3(%arg0: i32) -> (i32, i32) {
    %c0_i32 = arith.constant 0 : i32
    %c0_i32_0 = arith.constant 0 : i32
    %c0_i32_1 = arith.constant 0 : i32
    return %c0_i32, %c0_i32_0 : i32, i32
  }
  func.func @transform_4(%arg0: i32) -> (i32, i32, i32) {
    %c0_i32 = arith.constant 0 : i32
    %c0_i32_0 = arith.constant 0 : i32
    %c0_i32_1 = arith.constant 0 : i32
    return %arg0, %c0_i32, %c0_i32_0 : i32, i32, i32
  }
  func.func @transform_5(%arg0: i32) -> (i32, i32, i32) {
    %c0_i32 = arith.constant 0 : i32
    %c0_i32_0 = arith.constant 0 : i32
    %c0_i32_1 = arith.constant 0 : i32
    return %arg0, %c0_i32, %c0_i32_0 : i32, i32, i32
  }
  func.func @transform_6(%arg0: i32) -> (i32, i32, i32) {
    %c0_i32 = arith.constant 0 : i32
    %c0_i32_0 = arith.constant 0 : i32
    %c0_i32_1 = arith.constant 0 : i32
    return %arg0, %c0_i32, %c0_i32_0 : i32, i32, i32
  }
}

</mosaic_0001>

<bundles_post_ra>
// kernel: tpu_custom_call.1
= control target key start
LH: loop header
LB: loop body
LE: loop exit
PB: predicated region body
PF: predicated region fallthrough
CT: control target
= control target key end

     0   :  { %s5515_s0 = inlined_call_operand.vmem [shape: bf16[2,4,256], index: 0, kind: input, shape index: {}]   ;;  %s5516_s1 = inlined_call_operand.vmem [shape: bf16[4,256,4], index: 1, kind: input, shape index: {}]   ;;  %s5517_s2 = inlined_call_operand.vmem [shape: bf16[4,4,256], index: 2, kind: input, shape index: {}]   ;;  %s5518_s3 = inlined_call_operand.vmem [shape: f32[4,256], index: 3, kind: input, shape index: {}]   ;;  %s5519_s4 = inlined_call_operand.hbm [shape: f32[2,256,256], index: 4, kind: output, shape index: {0}]   ;;  %s5520_s5 = inlined_call_operand.hbm [shape: f32[2,128,256], index: 5, kind: output, shape index: {1}]   ;;  %s5521_s6 = inlined_call_operand.hbm [shape: f32[2,4,256], index: 6, kind: output, shape index: {2}]  }
   0x1   :  { %5529 = sst [smem:[#allocation47_spill]] %s5515_s0 }
   0x2   :  { %5530 = sst [smem:[#allocation48_spill]] %s5516_s1 }
   0x3   :  { %5531 = sst [smem:[#allocation49_spill]] %s5517_s2 }
   0x4   :  { %12 = vsyncpa [#allocation3], 0 }
   0x5   :  { %14 = vsyncpa [#allocation3 + $0x1], 0 }
   0x6   :  { %15 = vsyncpa [#allocation5], 0 }
   0x7   :  { %17 = vsyncpa [#allocation5 + $0x1], 0  ;;  %s3790_s21 = smov 0   ;;  %s3792_s22 = smov 0  }
   0x8   :  { %s3794_s23 = smov 0   ;;  %s3796_s24 = smov 0  }
   0x9 LB: > { %s3811_s25 = sadd.s32 4294967295, %s3744_s24   ;;  %s5527_s26 = sadd.s32 4294967294, %s3744_s24   ;;  %s3744_s24 = sphi %s3796_s24, %s5618_s24   ;;  %s3740_s23 = sphi %s3794_s23, %s5617_s23   ;;  %s3736_s22 = sphi %s3792_s22, %s5616_s22   ;;  %s3732_s21 = sphi %s3790_s21, %s5615_s21  }
   0xa   : > { %s3815_s27 = sadd.s32 1, %s3744_s24   ;;  %s119_s28 = sadd.s32 1, %s3740_s23 }
   0xb   : > { %s116_s29 = ssub.s32 %s3744_s24, %s3815_s27  ;;  %p129_p0 = scmp.ne.s32.totalorder %s3740_s23, %s3736_s22 }
   0xc   : > { %p117_p1 = scmp.eq.s32.totalorder %s116_s29, 0  ;;  %p130_p2 = scmp.eq.s32.totalorder %s3811_s25, 1 }
   0xd   : > { %p135_p3 = scmp.ne.s32.totalorder %s3736_s22, %s3732_s21  ;;  %p136_p4 = scmp.eq.s32.totalorder %s5527_s26, 1 }
   0xe   : > { %s3828_s30 = scalar_select %p117_p1, %s3740_s23, %s119_s28  }
   0xf   : > { %p3830_p5 = por %p130_p2, %p129_p0  ;;  %p3834_p6 = por %p136_p4, %p135_p3 }
  0x10   : > { %p2917_p7 = scmp.ge.s32.totalorder %s3744_s24, 1  ;;  %p223_p8 = scmp.lt.s32.totalorder %s3744_s24, 3 }
  0x12   : > { %p224_p9 = pnand %p2917_p7, %p223_p8 }
  0x14   : > { %227 = sbr.rel (%p224_p9) target bundleno = 1200 (0x4b0), region = 36 }
  0x19   : > { %s5534_s1 = sld [smem:[#allocation48_spill]]  ;;  %p263_p10 = scmp.lt.s32.totalorder %s3811_s25, 1  ;;  %v3746_v2 = vmov 0.0|0.0   ;;  %vm447_vm0 = vcmask 31744   ;;  %v271_v8 = vlaneseq  ;;  %vm496_vm2 = vcmask 1041408  }
  0x1a   : > { %599 = vmatpush.bf16.msra.mxu1 %v3746_v2  ;;  %911 = vmatpush.bf16.msra.mxu3 %v3746_v2  ;;  %s5535_s0 = sld [smem:[#allocation47_spill]]  ;;  %s3747_s29 = smov 127  }
  0x1b   : > { %s264_s13 = scalar_select %p263_p10, %s3811_s25, 1  ;;  %v3867_v9 = vand.u32 127, %v271_v8 }
  0x1c   : > { %s5537_s2 = sld [smem:[#allocation49_spill]]  ;;  %s3748_s19 = smov 125  }
  0x1d   : > { %s3417_s14 = sshll.u32 %s264_s13, 2  ;;  %5536 = vst [vmem:[#allocation9_spill] sm:$0xff] %v3867_v9  ;;  %vm274_vm1 = vcmp.lt.s32.totalorder %v3867_v9, 17  ;;  %vm327_vm3 = vcmp.lt.s32.totalorder %v3867_v9, 127  ;;  %vm1427_vm4 = vcmp.lt.s32.totalorder %v3867_v9, 125  ;;  %vm1002_vm5 = vcmp.lt.s32.totalorder %v3867_v9, 126 }
  0x1e   : > { %1272 = vmatpush.bf16.msrb.mxu1 %v3746_v2  ;;  %1697 = vmatpush.bf16.msrb.mxu3 %v3746_v2  ;;  %s4348_s28 = sand.u32 1, %s3736_s22   ;;  %s3750_s10 = smov 1  }
  0x1f   : > { %v3843_v0 = vld [vmem:[%s5534_s1 + $0x80] sm:$0xff]  ;;  %v3859_v5 = vld [vmem:[%s5534_s1 + $0x88] sm:$0xff]  ;;  %v3877_v16 = vld [vmem:[%s5534_s1 + $0x90] sm:$0xff]  ;;  %s3751_s11 = smov 2   ;;  %s5528_s12 = smov 3  }
  0x20   : > { %v3418_v1 = vld [vmem:[%s5534_s1] sm:$0xff]  ;;  %3035 = vmatmul.msk.bf16.vlgmr.msra.gmra.mxu1 %vm447_vm0, %v3843_v0  ;;  %s267_s17 = scalar_lea.vmem %s5535_s0, %s3417_s14  ;;  %v3419_v6 = vld [vmem:[%s5534_s1 + $0x8] sm:$0xff]  ;;  %v3420_v17 = vld [vmem:[%s5534_s1 + $0x10] sm:$0xff]  ;;  %s2919_s14 = sshll.u32 %s4348_s28, 8 }
  0x21   : > { %3131 = vmatmul.msk.bf16.vlgmr.msra.gmra.mxu3 %vm447_vm0, %v3418_v1  ;;  %v269_v3 = vld [vmem:[%s267_s17] sm:$0xf]  ;;  %v3893_v20 = vld [vmem:[%s5534_s1 + $0x98] sm:$0xff]  ;;  %v3917_v24 = vld [vmem:[%s5534_s1 + $0xa8] sm:$0xff]  ;;  %s4725_s15 = scalar_lea.vmem [#allocation4], %s2919_s14  ;;  %s2736_s13 = sand.u32 1, %s3811_s25  }
  0x22   : > { %v270_v4 = vunpack.c.l.bf16 %v269_v3  ;;  %v3421_v21 = vld [vmem:[%s5534_s1 + $0x18] sm:$0xff]  ;;  %v3905_v22 = vld [vmem:[%s5534_s1 + $0xa0] sm:$0xff]  ;;  %v3423_v25 = vld [vmem:[%s5534_s1 + $0x28] sm:$0xff]  ;;  %s3483_s14 = sshll.u32 %s3811_s25, 8 }
  0x23   : > { %v3422_v23 = vld [vmem:[%s5534_s1 + $0x20] sm:$0xff]  ;;  %v3929_v26 = vld [vmem:[%s5534_s1 + $0xb0] sm:$0xff]  ;;  %v3941_v28 = vld [vmem:[%s5534_s1 + $0xb8] sm:$0xff]  ;;  %s2770_s18 = scalar_lea.hbm %s5520_s5, %s3483_s14  ;;  %s3642_s14 = scalar_lea.hbm %s5520_s5, 512 }
  0x24   : > { %277 = vst [vmem:[#allocation1] ss:$2 sm:$0xff] %v270_v4  ;;  %v3424_v27 = vld [vmem:[%s5534_s1 + $0x30] sm:$0xff]  ;;  %v3425_v29 = vld [vmem:[%s5534_s1 + $0x38] sm:$0xff]  ;;  %v3953_v30 = vld [vmem:[%s5534_s1 + $0xc0] sm:$0xff]  ;;  %s2773_s20 = sshll.u32 %s2770_s18, 4  ;;  %s2774_s20 = int_to_ptr.hbm [resolvable:$true] %s2773_s20 }
  0x25   : > { %v3426_v31 = vld [vmem:[%s5534_s1 + $0x40] sm:$0xff]  ;;  %v3970_v41 = vld [vmem:[%s5534_s1 + $0xc8] sm:$0xff]  ;;  %v3991_v56 = vld [vmem:[%s5534_s1 + $0xd0] sm:$0xff] }
  0x26   : > { %v3427_v42 = vld [vmem:[%s5534_s1 + $0x48] sm:$0xff]  ;;  %v3428_v57 = vld [vmem:[%s5534_s1 + $0x50] sm:$0xff]  ;;  %v3403_v59 = vld [vmem:[%s5537_s2 + $0x4] sm:$0xf] }
  0x27   : > { %v3429_v2 = vld [vmem:[%s5534_s1 + $0x58] sm:$0xff] }
  0x2b   : > { %v278_v7 = vld.sshfl [vmem:[#allocation1] sm:$0xff pattern:$0x75316420] }
  0x2c   : > { %318 = vst [vmem:[#allocation1] ss:$2 sm:$0xff] %v270_v4  ;;  %v282_v10 = vsel %vm274_vm1, %v278_v7, 0.0 }
  0x2d   : > { %v284_v13 = vpack.c.bf16 %v282_v10, %v282_v10  ;;  %v4030_v10 = vld [vmem:[%s5534_s1 + $0xe0] sm:$0xff] }
  0x2f   : > { %v810_v15 = vsel %vm496_vm2, %v284_v13, 0 }
  0x30   : > { %3036 = vmatmul.msk.bf16.gmra.mxu1 %vm447_vm0, %v3859_v5  ;;  %822 = vmatpush.bf16.msra.mxu2 %v810_v15 }
  0x31   : > { %3132 = vmatmul.msk.bf16.gmra.mxu3 %vm447_vm0, %v3419_v6 }
  0x33   : > { %v319_v11 = vld.sshfl [vmem:[#allocation1] sm:$0xff pattern:$0x75316420]  ;;  %v320_v12 = vld.sshfl [vmem:[#allocation1 + $0x8] sm:$0xff pattern:$0x75316420]  ;;  %3115 = vmatmul.msk.bf16.vlgmr.msra.gmra.mxu2 %vm447_vm0, %v3418_v1 }
  0x34   : > { %v3543_v14 = vpack.i.bf16 %v320_v12, %v319_v11  ;;  %993 = vst [vmem:[#allocation1] ss:$2 sm:$0xff] %v270_v4  ;;  %v4012_v1 = vld [vmem:[%s5534_s1 + $0xd8] sm:$0xff]  ;;  %v3430_v11 = vld [vmem:[%s5534_s1 + $0x60] sm:$0xff] }
  0x36   : > { %3544 = vrot.lane.b32.xlu0 %v3543_v14, %s3747_s29  ;;  %s3749_s29 = smov 126  }
  0x3b   : > { %v3882_v18 = vld.sshfl [vmem:[#allocation1] sm:$0xff pattern:$0x75316420]  ;;  %v3884_v19 = vld.sshfl [vmem:[#allocation1 + $0x8] sm:$0xff pattern:$0x75316420] }
  0x3c   : > { %1418 = vst [vmem:[#allocation1] ss:$2 sm:$0xff] %v270_v4 }
  0x40   : > { %3037 = vmatmul.msk.bf16.gmra.mxu1 %vm447_vm0, %v3877_v16 }
  0x41   : > { %3133 = vmatmul.msk.bf16.gmra.mxu3 %vm447_vm0, %v3420_v17 }
  0x43   : > { %3116 = vmatmul.msk.bf16.gmra.mxu2 %vm447_vm0, %v3419_v6  ;;  %v1419_v51 = vld.sshfl [vmem:[#allocation1] sm:$0xff pattern:$0x75316420]  ;;  %v1420_v52 = vld.sshfl [vmem:[#allocation1 + $0x8] sm:$0xff pattern:$0x75316420] }
  0x44   : > { %v3548_v54 = vpack.i.bf16 %v1420_v52, %v1419_v51  ;;  %2455 = vst [vmem:[#allocation1] ss:$4 sm:$0xff] %v3403_v59  ;;  %v3466_v59 = vld [vmem:[%s5534_s1 + $0x180] sm:$0xff] }
  0x46   : > { %3549 = vrot.lane.b32.xlu0 %v3548_v54, %s3748_s19  ;;  %s2771_s19 = sshll.u32 %s4725_s15, 4  ;;  %s2772_s19 = int_to_ptr.vmem [resolvable:$true] %s2771_s19 }
  0x50   : > { %3038 = vmatmul.msk.bf16.gmra.mxu1 %vm447_vm0, %v3893_v20 }
  0x51   : > { %3134 = vmatmul.msk.bf16.gmra.mxu3 %vm447_vm0, %v3421_v21 }
  0x53   : > { %3117 = vmatmul.msk.bf16.gmra.mxu2 %vm447_vm0, %v3420_v17 }
  0x60   : > { %3039 = vmatmul.msk.bf16.gmra.mxu1 %vm447_vm0, %v3905_v22 }
  0x61   : > { %3135 = vmatmul.msk.bf16.gmra.mxu3 %vm447_vm0, %v3422_v23 }
  0x63   : > { %3118 = vmatmul.msk.bf16.gmra.mxu2 %vm447_vm0, %v3421_v21  ;;  %v4048_v21 = vld [vmem:[%s5534_s1 + $0xe8] sm:$0xff] }
  0x70   : > { %3040 = vmatmul.msk.bf16.gmra.mxu1 %vm447_vm0, %v3917_v24 }
  0x71   : > { %3136 = vmatmul.msk.bf16.gmra.mxu3 %vm447_vm0, %v3423_v25 }
  0x73   : > { %3119 = vmatmul.msk.bf16.gmra.mxu2 %vm447_vm0, %v3422_v23  ;;  %v3431_v23 = vld [vmem:[%s5534_s1 + $0x68] sm:$0xff] }
  0x80   : > { %3041 = vmatmul.msk.bf16.gmra.mxu1 %vm447_vm0, %v3929_v26 }
  0x81   : > { %3137 = vmatmul.msk.bf16.gmra.mxu3 %vm447_vm0, %v3424_v27 }
  0x83   : > { %3120 = vmatmul.msk.bf16.gmra.mxu2 %vm447_vm0, %v3423_v25 }
  0x90   : > { %3042 = vmatmul.msk.bf16.gmra.mxu1 %vm447_vm0, %v3941_v28 }
  0x91   : > { %3138 = vmatmul.msk.bf16.gmra.mxu3 %vm447_vm0, %v3425_v29 }
  0x93   : > { %3121 = vmatmul.msk.bf16.gmra.mxu2 %vm447_vm0, %v3424_v27 }
  0x9d   : > { %v601_v32 = vpop.f32.mrf.mxu1 }
  0xa0   : > { %3043 = vmatmul.msk.bf16.gmra.mxu1 %vm447_vm0, %v3953_v30 }
  0xa1   : > { %3139 = vmatmul.msk.bf16.gmra.mxu3 %vm447_vm0, %v3426_v31 }
  0xa3   : > { %3122 = vmatmul.msk.bf16.gmra.mxu2 %vm447_vm0, %v3425_v29 }
  0xa4   : > { %v913_v33 = vpop.f32.mrf.mxu3 }
  0xa5   : > { %v3961_v34 = vadd.f32 %v913_v33, %v601_v32  ;;  %v603_v35 = vpop.f32.mrf.mxu1 }
  0xa8   : > { %v3545_v36 = vpop.permute.xlu0 %3544 }
  0xa9   : > { %v3547_v37 = vunpack.i.h.bf16 %v3545_v36  ;;  %v3546_v38 = vunpack.i.l.bf16 %v3545_v36  ;;  %v4070_v36 = vld [vmem:[%s5534_s1 + $0xf0] sm:$0xff] }
  0xab   : > { %v328_v43 = vsel %vm327_vm3, %v3546_v38, %v3547_v37  ;;  %v3432_v37 = vld [vmem:[%s5534_s1 + $0x70] sm:$0xff] }
  0xac   : > { %v915_v39 = vpop.f32.mrf.mxu3  ;;  %v330_v45 = vsel %vm274_vm1, %v328_v43, 0.0 }
  0xad   : > { %v3965_v40 = vadd.f32 %v915_v39, %v603_v35  ;;  %v606_v44 = vpop.f32.mrf.mxu1  ;;  %v332_v46 = vpack.c.bf16 %v330_v45, %v330_v45 }
  0xaf   : > { %v498_v47 = vsel %vm496_vm2, %v332_v46, 0  ;;  %v4094_v46 = vld [vmem:[%s5534_s1 + $0xf8] sm:$0xff] }
  0xb0   : > { %3044 = vmatmul.msk.bf16.gmra.mxu1 %vm447_vm0, %v3970_v41  ;;  %510 = vmatpush.bf16.msra.mxu0 %v498_v47  ;;  %v3433_v47 = vld [vmem:[%s5534_s1 + $0x78] sm:$0xff] }
  0xb1   : > { %3140 = vmatmul.msk.bf16.gmra.mxu3 %vm447_vm0, %v3427_v42 }
  0xb3   : > { %3019 = vmatmul.msk.bf16.vlgmr.msra.gmra.mxu0 %vm447_vm0, %v3843_v0  ;;  %3123 = vmatmul.msk.bf16.gmra.mxu2 %vm447_vm0, %v3426_v31 }
  0xb4   : > { %v918_v48 = vpop.f32.mrf.mxu3 }
  0xb5   : > { %v3981_v49 = vadd.f32 %v918_v48, %v606_v44  ;;  %v608_v50 = vpop.f32.mrf.mxu1 }
  0xbc   : > { %v920_v53 = vpop.f32.mrf.mxu3 }
  0xbd   : > { %v3986_v55 = vadd.f32 %v920_v53, %v608_v50  ;;  %v611_v58 = vpop.f32.mrf.mxu1 }
  0xc0   : > { %3045 = vmatmul.msk.bf16.gmra.mxu1 %vm447_vm0, %v3991_v56 }
  0xc1   : > { %3141 = vmatmul.msk.bf16.gmra.mxu3 %vm447_vm0, %v3428_v57 }
  0xc3   : > { %3020 = vmatmul.msk.bf16.gmra.mxu0 %vm447_vm0, %v3859_v5  ;;  %3124 = vmatmul.msk.bf16.gmra.mxu2 %vm447_vm0, %v3427_v42 }
  0xc4   : > { %v923_v60 = vpop.f32.mrf.mxu3 }
  0xc5   : > { %v4002_v61 = vadd.f32 %v923_v60, %v611_v58  ;;  %v613_v62 = vpop.f32.mrf.mxu1  ;;  %v4116_v58 = vld [vmem:[%s5534_s1 + $0x100] sm:$0xff] }
  0xcc   : > { %v925_v63 = vpop.f32.mrf.mxu3 }
  0xcd   : > { %v4007_v0 = vadd.f32 %v925_v63, %v613_v62  ;;  %v616_v3 = vpop.f32.mrf.mxu1 }
  0xd0   : > { %3046 = vmatmul.msk.bf16.gmra.mxu1 %vm447_vm0, %v4012_v1 }
  0xd1   : > { %3142 = vmatmul.msk.bf16.gmra.mxu3 %vm447_vm0, %v3429_v2 }
  0xd3   : > { %3021 = vmatmul.msk.bf16.gmra.mxu0 %vm447_vm0, %v3877_v16  ;;  %3125 = vmatmul.msk.bf16.gmra.mxu2 %vm447_vm0, %v3428_v57 }
  0xd4   : > { %v928_v4 = vpop.f32.mrf.mxu3 }
  0xd5   : > { %v4020_v5 = vadd.f32 %v928_v4, %v616_v3  ;;  %v618_v6 = vpop.f32.mrf.mxu1 }
  0xdc   : > { %v930_v7 = vpop.f32.mrf.mxu3 }
  0xdd   : > { %v4025_v8 = vadd.f32 %v930_v7, %v618_v6  ;;  %v621_v12 = vpop.f32.mrf.mxu1  ;;  %v4138_v7 = vld [vmem:[%s5534_s1 + $0x108] sm:$0xff] }
  0xe0   : > { %3047 = vmatmul.msk.bf16.gmra.mxu1 %vm447_vm0, %v4030_v10 }
  0xe1   : > { %3143 = vmatmul.msk.bf16.gmra.mxu3 %vm447_vm0, %v3430_v11 }
  0xe3   : > { %3022 = vmatmul.msk.bf16.gmra.mxu0 %vm447_vm0, %v3893_v20  ;;  %3126 = vmatmul.msk.bf16.gmra.mxu2 %vm447_vm0, %v3429_v2  ;;  %v4056_v20 = vpop.f32.mrf.mxu2 }
  0xe4   : > { %v933_v13 = vpop.f32.mrf.mxu3 }
  0xe5   : > { %v4038_v14 = vadd.f32 %v933_v13, %v621_v12  ;;  %v623_v15 = vpop.f32.mrf.mxu1  ;;  %v3550_v13 = vpop.permute.xlu0 %3549 }
  0xeb   : > { %v4062_v32 = vpop.f32.mrf.mxu2 }
  0xec   : > { %v935_v16 = vpop.f32.mrf.mxu3 }
  0xed   : > { %v4043_v17 = vadd.f32 %v935_v16, %v623_v15  ;;  %v626_v25 = vpop.f32.mrf.mxu1  ;;  %v3551_v15 = vunpack.i.l.bf16 %v3550_v13 }
  0xf0   : > { %3048 = vmatmul.msk.bf16.gmra.mxu1 %vm447_vm0, %v4048_v21 }
  0xf1   : > { %3144 = vmatmul.msk.bf16.gmra.mxu3 %vm447_vm0, %v3431_v23 }
  0xf3   : > { %3023 = vmatmul.msk.bf16.gmra.mxu0 %vm447_vm0, %v3905_v22  ;;  %3127 = vmatmul.msk.bf16.gmra.mxu2 %vm447_vm0, %v3430_v11  ;;  %v3553_v22 = vpack.i.bf16 %v3884_v19, %v3882_v18  ;;  %v4080_v39 = vpop.f32.mrf.mxu2  ;;  %v3467_v11 = vld [vmem:[%s5534_s1 + $0x188] sm:$0xff] }
  0xf4   : > { %v938_v27 = vpop.f32.mrf.mxu3 }
  0xf5   : > { %v4058_v29 = vadd.f32 %v938_v27, %v626_v25  ;;  %v628_v31 = vpop.f32.mrf.mxu1  ;;  %3554 = vrot.lane.b32.xlu1 %v3553_v22, %s3749_s29  ;;  %s2918_s29 = sshll.u32 %s4348_s28, 9 }
  0xf6   : > { %s4364_s9 = scalar_lea.vmem [#allocation2], %s2918_s29  ;;  %s3482_s29 = sshll.u32 %s3811_s25, 9 }
  0xfb   : > { %v4086_v45 = vpop.f32.mrf.mxu2 }
  0xfc   : > { %v940_v33 = vpop.f32.mrf.mxu3 }
  0xfd   : > { %v4065_v35 = vadd.f32 %v940_v33, %v628_v31  ;;  %v631_v38 = vpop.f32.mrf.mxu1 }
 0x100   : > { %3049 = vmatmul.msk.bf16.gmra.mxu1 %vm447_vm0, %v4070_v36 }
 0x101   : > { %3145 = vmatmul.msk.bf16.gmra.mxu3 %vm447_vm0, %v3432_v37 }
 0x103   : > { %3024 = vmatmul.msk.bf16.gmra.mxu0 %vm447_vm0, %v3917_v24  ;;  %3128 = vmatmul.msk.bf16.gmra.mxu2 %vm447_vm0, %v3431_v23  ;;  %v4102_v24 = vpop.f32.mrf.mxu2 }
 0x104   : > { %v943_v42 = vpop.f32.mrf.mxu3 }
 0x105   : > { %v4082_v43 = vadd.f32 %v943_v42, %v631_v38  ;;  %v633_v44 = vpop.f32.mrf.mxu1 }
 0x10b   : > { %v4108_v53 = vpop.f32.mrf.mxu2 }
 0x10c   : > { %v945_v18 = vpop.f32.mrf.mxu3 }
 0x10d   : > { %v4089_v19 = vadd.f32 %v945_v18, %v633_v44  ;;  %v636_v48 = vpop.f32.mrf.mxu1 }
 0x110   : > { %3050 = vmatmul.msk.bf16.gmra.mxu1 %vm447_vm0, %v4094_v46 }
 0x111   : > { %3146 = vmatmul.msk.bf16.gmra.mxu3 %vm447_vm0, %v3433_v47 }
 0x113   : > { %3025 = vmatmul.msk.bf16.gmra.mxu0 %vm447_vm0, %v3929_v26  ;;  %3129 = vmatmul.msk.bf16.gmra.mxu2 %vm447_vm0, %v3432_v37  ;;  %v4124_v26 = vpop.f32.mrf.mxu2 }
 0x114   : > { %v948_v50 = vpop.f32.mrf.mxu3 }
 0x115   : > { %v4104_v51 = vadd.f32 %v948_v50, %v636_v48  ;;  %v638_v52 = vpop.f32.mrf.mxu1  ;;  %v3468_v50 = vld [vmem:[%s5534_s1 + $0x190] sm:$0xff] }
 0x11b   : > { %v4130_v3 = vpop.f32.mrf.mxu2 }
 0x11c   : > { %v950_v54 = vpop.f32.mrf.mxu3 }
 0x11d   : > { %v4111_v57 = vadd.f32 %v950_v54, %v638_v52  ;;  %v641_v60 = vpop.f32.mrf.mxu1 }
 0x120   : > { %3259 = vmatmul.msk.bf16.vlgmr.msrb.gmra.mxu1 %vm447_vm0, %v4116_v58 }
 0x121   : > { %3387 = vmatmul.msk.bf16.vlgmr.msrb.gmra.mxu3 %vm447_vm0, %v3466_v59 }
 0x123   : > { %3026 = vmatmul.msk.bf16.gmra.mxu0 %vm447_vm0, %v3941_v28  ;;  %3130 = vmatmul.msk.bf16.gmra.mxu2 %vm447_vm0, %v3433_v47  ;;  %v3552_v28 = vunpack.i.h.bf16 %v3550_v13  ;;  %v4150_v25 = vpop.f32.mrf.mxu2 }
 0x124   : > { %v953_v62 = vpop.f32.mrf.mxu3 }
 0x125   : > { %v4126_v63 = vadd.f32 %v953_v62, %v641_v60  ;;  %v643_v2 = vpop.f32.mrf.mxu1  ;;  %v1428_v27 = vsel %vm1427_vm4, %v3551_v15, %v3552_v28  ;;  %v4198_v15 = vld [vmem:[%s5534_s1 + $0x118] sm:$0xff] }
 0x126   : > { %v1430_v33 = vsel %vm274_vm1, %v1428_v27, 0.0 }
 0x127   : > { %v1432_v22 = vpack.c.bf16 %v1430_v33, %v1430_v33 }
 0x129   : > { %v1596_v42 = vsel %vm496_vm2, %v1432_v22, 0 }
 0x12a   : > { %1608 = vmatpush.bf16.msrb.mxu2 %v1596_v42 }
 0x12b   : > { %v4162_v18 = vpop.f32.mrf.mxu2 }
 0x12c   : > { %v955_v4 = vpop.f32.mrf.mxu3 }
 0x12d   : > { %v4133_v6 = vadd.f32 %v955_v4, %v643_v2  ;;  %v646_v12 = vpop.f32.mrf.mxu1 }
 0x130   : > { %3260 = vmatmul.msk.bf16.gmra.mxu1 %vm447_vm0, %v4138_v7  ;;  %v512_v16 = vpop.f32.mrf.mxu0 }
 0x131   : > { %3388 = vmatmul.msk.bf16.gmra.mxu3 %vm447_vm0, %v3467_v11  ;;  %v4148_v23 = vadd.f32 %v4056_v20, %v512_v16 }
 0x133   : > { %3027 = vmatmul.msk.bf16.gmra.mxu0 %vm447_vm0, %v3953_v30  ;;  %3371 = vmatmul.msk.bf16.vlgmr.msrb.gmra.mxu2 %vm447_vm0, %v3466_v59  ;;  %v4170_v30 = vld [vmem:[%s5534_s1 + $0x110] sm:$0xff]  ;;  %v4181_v59 = vpop.f32.mrf.mxu2 }
 0x134   : > { %v958_v31 = vpop.f32.mrf.mxu3 }
 0x135   : > { %v4154_v37 = vadd.f32 %v958_v31, %v646_v12  ;;  %v648_v38 = vpop.f32.mrf.mxu1 }
 0x138   : > { %v514_v44 = vpop.f32.mrf.mxu0 }
 0x139   : > { %v4160_v20 = vadd.f32 %v4062_v32, %v514_v44 }
 0x13b   : > { %v4190_v13 = vpop.f32.mrf.mxu2 }
 0x13c   : > { %v960_v47 = vpop.f32.mrf.mxu3 }
 0x13d   : > { %v4165_v48 = vadd.f32 %v960_v47, %v648_v38  ;;  %v651_v52 = vpop.f32.mrf.mxu1 }
 0x140   : > { %3261 = vmatmul.msk.bf16.gmra.mxu1 %vm447_vm0, %v4170_v30  ;;  %v517_v32 = vpop.f32.mrf.mxu0 }
 0x141   : > { %3389 = vmatmul.msk.bf16.gmra.mxu3 %vm447_vm0, %v3468_v50  ;;  %v4179_v54 = vadd.f32 %v4080_v39, %v517_v32 }
 0x143   : > { %3028 = vmatmul.msk.bf16.gmra.mxu0 %vm447_vm0, %v3970_v41  ;;  %3372 = vmatmul.msk.bf16.gmra.mxu2 %vm447_vm0, %v3467_v11  ;;  %v3469_v41 = vld [vmem:[%s5534_s1 + $0x198] sm:$0xff]  ;;  %v4209_v27 = vpop.f32.mrf.mxu2 }
 0x144   : > { %v963_v60 = vpop.f32.mrf.mxu3 }
 0x145   : > { %v4183_v62 = vadd.f32 %v963_v60, %v651_v52  ;;  %v653_v2 = vpop.f32.mrf.mxu1  ;;  %v4226_v52 = vld [vmem:[%s5534_s1 + $0x120] sm:$0xff] }
 0x148   : > { %v519_v4 = vpop.f32.mrf.mxu0 }
 0x149   : > { %v4188_v12 = vadd.f32 %v4086_v45, %v519_v4 }
 0x14b   : > { %v4218_v44 = vpop.f32.mrf.mxu2 }
 0x14c   : > { %v965_v28 = vpop.f32.mrf.mxu3 }
 0x14d   : > { %v4193_v39 = vadd.f32 %v965_v28, %v653_v2  ;;  %v656_v16 = vpop.f32.mrf.mxu1 }
 0x150   : > { %3262 = vmatmul.msk.bf16.gmra.mxu1 %vm447_vm0, %v4198_v15  ;;  %v522_v45 = vpop.f32.mrf.mxu0 }
 0x151   : > { %3390 = vmatmul.msk.bf16.gmra.mxu3 %vm447_vm0, %v3469_v41  ;;  %v4207_v11 = vadd.f32 %v4102_v24, %v522_v45 }
 0x153   : > { %3029 = vmatmul.msk.bf16.gmra.mxu0 %vm447_vm0, %v3991_v56  ;;  %3373 = vmatmul.msk.bf16.gmra.mxu2 %vm447_vm0, %v3468_v50  ;;  %v3470_v56 = vld [vmem:[%s5534_s1 + $0x1a0] sm:$0xff]  ;;  %v4237_v60 = vpop.f32.mrf.mxu2 }
 0x154   : > { %v968_v31 = vpop.f32.mrf.mxu3 }
 0x155   : > { %v4211_v33 = vadd.f32 %v968_v31, %v656_v16  ;;  %v658_v22 = vpop.f32.mrf.mxu1 }
 0x158   : > { %v524_v38 = vpop.f32.mrf.mxu0 }
 0x159   : > { %v4216_v42 = vadd.f32 %v4108_v53, %v524_v38  ;;  %v4254_v38 = vld [vmem:[%s5534_s1 + $0x128] sm:$0xff] }
 0x15b   : > { %v4246_v31 = vpop.f32.mrf.mxu2 }
 0x15c   : > { %v970_v47 = vpop.f32.mrf.mxu3 }
 0x15d   : > { %v4221_v24 = vadd.f32 %v970_v47, %v658_v22  ;;  %v661_v32 = vpop.f32.mrf.mxu1 }
 0x160   : > { %3263 = vmatmul.msk.bf16.gmra.mxu1 %vm447_vm0, %v4226_v52  ;;  %v527_v53 = vpop.f32.mrf.mxu0 }
 0x161   : > { %3391 = vmatmul.msk.bf16.gmra.mxu3 %vm447_vm0, %v3470_v56  ;;  %v4235_v50 = vadd.f32 %v4124_v26, %v527_v53 }
 0x163   : > { %5538 = vst [vmem:[#allocation10_spill] sm:$0xff] %v4235_v50  ;;  %3030 = vmatmul.msk.bf16.gmra.mxu0 %vm447_vm0, %v4012_v1  ;;  %3374 = vmatmul.msk.bf16.gmra.mxu2 %vm447_vm0, %v3469_v41  ;;  %v3471_v1 = vld [vmem:[%s5534_s1 + $0x1a8] sm:$0xff] }
 0x164   : > { %v973_v2 = vpop.f32.mrf.mxu3 }
 0x165   : > { %v4239_v4 = vadd.f32 %v973_v2, %v661_v32  ;;  %v663_v28 = vpop.f32.mrf.mxu1 }
 0x167   : > { %5539 = vst [vmem:[#allocation11_spill] sm:$0xff] %v4239_v4 }
 0x168   : > { %v529_v16 = vpop.f32.mrf.mxu0 }
 0x169   : > { %v4244_v45 = vadd.f32 %v4130_v3, %v529_v16  ;;  %v3555_v3 = vpop.permute.xlu1 %3554 }
 0x16a   : > { %v3557_v53 = vunpack.i.h.bf16 %v3555_v3  ;;  %v3556_v2 = vunpack.i.l.bf16 %v3555_v3 }
 0x16b   : > { %5540 = vst [vmem:[#allocation12_spill] sm:$0xff] %v4244_v45 }
 0x16c   : > { %v975_v22 = vpop.f32.mrf.mxu3 }
 0x16d   : > { %v4249_v26 = vadd.f32 %v975_v22, %v663_v28  ;;  %v666_v47 = vpop.f32.mrf.mxu1  ;;  %v4265_v28 = vpop.f32.mrf.mxu2 }
 0x16f   : > { %5541 = vst [vmem:[#allocation13_spill] sm:$0xff] %v4249_v26  ;;  %v1003_v26 = vsel %vm1002_vm5, %v3556_v2, %v3557_v53  ;;  %v4286_v53 = vld [vmem:[%s5534_s1 + $0x130] sm:$0xff] }
 0x170   : > { %3264 = vmatmul.msk.bf16.gmra.mxu1 %vm447_vm0, %v4254_v38  ;;  %v532_v41 = vpop.f32.mrf.mxu0  ;;  %v1005_v50 = vsel %vm274_vm1, %v1003_v26, 0.0 }
 0x171   : > { %3392 = vmatmul.msk.bf16.gmra.mxu3 %vm447_vm0, %v3471_v1  ;;  %v4263_v32 = vadd.f32 %v4150_v25, %v532_v41  ;;  %v1007_v4 = vpack.c.bf16 %v1005_v50, %v1005_v50 }
 0x173   : > { %5542 = vst [vmem:[#allocation14_spill] sm:$0xff] %v4263_v32  ;;  %3031 = vmatmul.msk.bf16.gmra.mxu0 %vm447_vm0, %v4030_v10  ;;  %v1171_v3 = vsel %vm496_vm2, %v1007_v4, 0 }
 0x174   : > { %v978_v16 = vpop.f32.mrf.mxu3  ;;  %1183 = vmatpush.bf16.msrb.mxu0 %v1171_v3 }
 0x175   : > { %v4267_v22 = vadd.f32 %v978_v16, %v666_v47  ;;  %v668_v45 = vpop.f32.mrf.mxu1  ;;  %v4278_v32 = vpop.f32.mrf.mxu2  ;;  %3375 = vmatmul.msk.bf16.gmra.mxu2 %vm447_vm0, %v3470_v56 }
 0x178   : > { %v534_v25 = vpop.f32.mrf.mxu0 }
 0x179   : > { %v4275_v41 = vadd.f32 %v4162_v18, %v534_v25  ;;  %v3472_v18 = vld [vmem:[%s5534_s1 + $0x1b0] sm:$0xff] }
 0x17b   : > { %5543 = vst [vmem:[#allocation15_spill] sm:$0xff] %v4275_v41 }
 0x17c   : > { %v980_v47 = vpop.f32.mrf.mxu3 }
 0x17d   : > { %v4281_v10 = vadd.f32 %v980_v47, %v668_v45  ;;  %v671_v50 = vpop.f32.mrf.mxu1  ;;  %v4297_v45 = vpop.f32.mrf.mxu2 }
 0x17f   : > { %5544 = vst [vmem:[#allocation16_spill] sm:$0xff] %v4281_v10 }
 0x180   : > { %3265 = vmatmul.msk.bf16.gmra.mxu1 %vm447_vm0, %v4286_v53  ;;  %v537_v56 = vpop.f32.mrf.mxu0 }
 0x181   : > { %3393 = vmatmul.msk.bf16.gmra.mxu3 %vm447_vm0, %v3472_v18  ;;  %v4295_v4 = vadd.f32 %v4181_v59, %v537_v56 }
 0x183   : > { %5545 = vst [vmem:[#allocation17_spill] sm:$0xff] %v4295_v4  ;;  %3032 = vmatmul.msk.bf16.gmra.mxu0 %vm447_vm0, %v4048_v21  ;;  %v3473_v21 = vld [vmem:[%s5534_s1 + $0x1b8] sm:$0xff] }
 0x184   : > { %v983_v26 = vpop.f32.mrf.mxu3 }
 0x185   : > { %v4299_v2 = vadd.f32 %v983_v26, %v671_v50  ;;  %v673_v16 = vpop.f32.mrf.mxu1  ;;  %v4306_v47 = vpop.f32.mrf.mxu2  ;;  %3376 = vmatmul.msk.bf16.gmra.mxu2 %vm447_vm0, %v3471_v1  ;;  %v4314_v50 = vld [vmem:[%s5534_s1 + $0x138] sm:$0xff] }
 0x187   : > { %5546 = vst [vmem:[#allocation18_spill] sm:$0xff] %v4299_v2 }
 0x188   : > { %v539_v25 = vpop.f32.mrf.mxu0 }
 0x189   : > { %v4304_v3 = vadd.f32 %v4190_v13, %v539_v25 }
 0x18b   : > { %5547 = vst [vmem:[#allocation19_spill] sm:$0xff] %v4304_v3 }
 0x18c   : > { %v985_v9 = vpop.f32.mrf.mxu3 }
 0x18d   : > { %v4309_v59 = vadd.f32 %v985_v9, %v673_v16  ;;  %v676_v56 = vpop.f32.mrf.mxu1  ;;  %v4325_v1 = vpop.f32.mrf.mxu2 }
 0x18f   : > { %5548 = vst [vmem:[#allocation20_spill] sm:$0xff] %v4309_v59 }
 0x190   : > { %3266 = vmatmul.msk.bf16.gmra.mxu1 %vm447_vm0, %v4314_v50  ;;  %v542_v13 = vpop.f32.mrf.mxu0 }
 0x191   : > { %3394 = vmatmul.msk.bf16.gmra.mxu3 %vm447_vm0, %v3473_v21  ;;  %v4323_v9 = vadd.f32 %v4209_v27, %v542_v13 }
 0x193   : > { %5549 = vst [vmem:[#allocation21_spill] sm:$0xff] %v4323_v9  ;;  %3033 = vmatmul.msk.bf16.gmra.mxu0 %vm447_vm0, %v4070_v36  ;;  %v3474_v36 = vld [vmem:[%s5534_s1 + $0x1c0] sm:$0xff] }
 0x194   : > { %v988_v26 = vpop.f32.mrf.mxu3 }
 0x195   : > { %v4327_v16 = vadd.f32 %v988_v26, %v676_v56  ;;  %v678_v25 = vpop.f32.mrf.mxu1  ;;  %v4334_v4 = vpop.f32.mrf.mxu2  ;;  %3377 = vmatmul.msk.bf16.gmra.mxu2 %vm447_vm0, %v3472_v18  ;;  %v4342_v56 = vld [vmem:[%s5534_s1 + $0x140] sm:$0xff] }
 0x197   : > { %5550 = vst [vmem:[#allocation22_spill] sm:$0xff] %v4327_v16 }
 0x198   : > { %v544_v3 = vpop.f32.mrf.mxu0 }
 0x199   : > { %v4332_v59 = vadd.f32 %v4218_v44, %v544_v3 }
 0x19b   : > { %5551 = vst [vmem:[#allocation23_spill] sm:$0xff] %v4332_v59 }
 0x19c   : > { %v990_v2 = vpop.f32.mrf.mxu3 }
 0x19d   : > { %v4337_v27 = vadd.f32 %v990_v2, %v678_v25  ;;  %v1274_v13 = vpop.f32.mrf.mxu1  ;;  %v4358_v3 = vpop.f32.mrf.mxu2 }
 0x19e   : > { %v1355_v18 = vadd.f32 %v1274_v13, %v3961_v34 }
 0x19f   : > { %5552 = vst [vmem:[#allocation24_spill] sm:$0xff] %v4337_v27 }
 0x1a0   : > { %3267 = vmatmul.msk.bf16.gmra.mxu1 %vm447_vm0, %v4342_v56  ;;  %v547_v44 = vpop.f32.mrf.mxu0 }
 0x1a1   : > { %3395 = vmatmul.msk.bf16.gmra.mxu3 %vm447_vm0, %v3474_v36  ;;  %v4356_v2 = vadd.f32 %v4237_v60, %v547_v44 }
 0x1a3   : > { %5553 = vst [vmem:[#allocation25_spill] sm:$0xff] %v4356_v2  ;;  %3034 = vmatmul.msk.bf16.gmra.mxu0 %vm447_vm0, %v4094_v46  ;;  %v4380_v46 = vld [vmem:[%s5534_s1 + $0x148] sm:$0xff] }
 0x1a4   : > { %v1699_v26 = vpop.f32.mrf.mxu3 }
 0x1a5   : > { %v4360_v25 = vadd.f32 %v1699_v26, %v1355_v18  ;;  %v1276_v59 = vpop.f32.mrf.mxu1  ;;  %v4372_v13 = vpop.f32.mrf.mxu2  ;;  %3378 = vmatmul.msk.bf16.gmra.mxu2 %vm447_vm0, %v3473_v21 }
 0x1a6   : > { %v1357_v34 = vadd.f32 %v1276_v59, %v3965_v40  ;;  %v3475_v40 = vld [vmem:[%s5534_s1 + $0x1c8] sm:$0xff] }
 0x1a7   : > { %1844 = vst [vmem:[%s4364_s9 + $0x8] sm:$0xff] %v4360_v25 }
 0x1a8   : > { %v549_v27 = vpop.f32.mrf.mxu0 }
 0x1a9   : > { %v4370_v60 = vadd.f32 %v4246_v31, %v549_v27 }
 0x1ab   : > { %5554 = vst [vmem:[#allocation26_spill] sm:$0xff] %v4370_v60 }
 0x1ac   : > { %v1701_v44 = vpop.f32.mrf.mxu3 }
 0x1ad   : > { %v4375_v18 = vadd.f32 %v1701_v44, %v1357_v34  ;;  %v1279_v59 = vpop.f32.mrf.mxu1  ;;  %v4398_v34 = vpop.f32.mrf.mxu2 }
 0x1ae   : > { %v1359_v27 = vadd.f32 %v1279_v59, %v3981_v49 }
 0x1af   : > { %1846 = vst [vmem:[%s4364_s9 + $0x18] sm:$0xff] %v4375_v18  ;;  %v4389_v31 = vpack.c.bf16 %v4375_v18, %v4360_v25 }
 0x1b0   : > { %3268 = vmatmul.msk.bf16.gmra.mxu1 %vm447_vm0, %v4380_v46  ;;  %v552_v21 = vpop.f32.mrf.mxu0 }
 0x1b1   : > { %3396 = vmatmul.msk.bf16.gmra.mxu3 %vm447_vm0, %v3475_v40  ;;  %v4396_v26 = vadd.f32 %v4265_v28, %v552_v21 }
 0x1b3   : > { %5555 = vst [vmem:[#allocation27_spill] sm:$0xff] %v4396_v26  ;;  %3243 = vmatmul.msk.bf16.vlgmr.msrb.gmra.mxu0 %vm447_vm0, %v4116_v58  ;;  %v4418_v58 = vld [vmem:[%s5534_s1 + $0x150] sm:$0xff] }
 0x1b4   : > { %v1704_v44 = vpop.f32.mrf.mxu3 }
 0x1b5   : > { %v4400_v60 = vadd.f32 %v1704_v44, %v1359_v27  ;;  %v1281_v2 = vpop.f32.mrf.mxu1  ;;  %v4410_v28 = vpop.f32.mrf.mxu2  ;;  %3379 = vmatmul.msk.bf16.gmra.mxu2 %vm447_vm0, %v3474_v36 }
 0x1b6   : > { %v1361_v16 = vadd.f32 %v1281_v2, %v3986_v55  ;;  %v3476_v55 = vld [vmem:[%s5534_s1 + $0x1d0] sm:$0xff] }
 0x1b7   : > { %1848 = vst [vmem:[%s4364_s9 + $0x28] sm:$0xff] %v4400_v60 }
 0x1b8   : > { %v554_v9 = vpop.f32.mrf.mxu0 }
 0x1b9   : > { %v4408_v49 = vadd.f32 %v4278_v32, %v554_v9 }
 0x1bb   : > { %5556 = vst [vmem:[#allocation28_spill] sm:$0xff] %v4408_v49 }
 0x1bc   : > { %v1706_v59 = vpop.f32.mrf.mxu3 }
 0x1bd   : > { %v4413_v21 = vadd.f32 %v1706_v59, %v1361_v16  ;;  %v1284_v2 = vpop.f32.mrf.mxu1  ;;  %v4436_v27 = vpop.f32.mrf.mxu2 }
 0x1be   : > { %v1363_v16 = vadd.f32 %v1284_v2, %v4002_v61 }
 0x1bf   : > { %1850 = vst [vmem:[%s4364_s9 + $0x38] sm:$0xff] %v4413_v21  ;;  %v4427_v32 = vpack.c.bf16 %v4413_v21, %v4400_v60 }
 0x1c0   : > { %3269 = vmatmul.msk.bf16.gmra.mxu1 %vm447_vm0, %v4418_v58  ;;  %v557_v9 = vpop.f32.mrf.mxu0 }
 0x1c1   : > { %3397 = vmatmul.msk.bf16.gmra.mxu3 %vm447_vm0, %v3476_v55  ;;  %v4434_v36 = vadd.f32 %v4297_v45, %v557_v9 }
 0x1c3   : > { %5557 = vst [vmem:[#allocation29_spill] sm:$0xff] %v4434_v36  ;;  %3244 = vmatmul.msk.bf16.gmra.mxu0 %vm447_vm0, %v4138_v7  ;;  %v4456_v7 = vld [vmem:[%s5534_s1 + $0x158] sm:$0xff] }
 0x1c4   : > { %v1709_v44 = vpop.f32.mrf.mxu3 }
 0x1c5   : > { %v4438_v59 = vadd.f32 %v1709_v44, %v1363_v16  ;;  %v1286_v49 = vpop.f32.mrf.mxu1  ;;  %v4448_v45 = vpop.f32.mrf.mxu2  ;;  %3380 = vmatmul.msk.bf16.gmra.mxu2 %vm447_vm0, %v3475_v40 }
 0x1c6   : > { %v1365_v41 = vadd.f32 %v1286_v49, %v4007_v0  ;;  %v3477_v0 = vld [vmem:[%s5534_s1 + $0x1d8] sm:$0xff] }
 0x1c7   : > { %1852 = vst [vmem:[%s4364_s9 + $0x48] sm:$0xff] %v4438_v59 }
 0x1c8   : > { %v559_v26 = vpop.f32.mrf.mxu0 }
 0x1c9   : > { %v4446_v61 = vadd.f32 %v4306_v47, %v559_v26 }
 0x1cb   : > { %5558 = vst [vmem:[#allocation30_spill] sm:$0xff] %v4446_v61 }
 0x1cc   : > { %v1711_v2 = vpop.f32.mrf.mxu3 }
 0x1cd   : > { %v4451_v9 = vadd.f32 %v1711_v2, %v1365_v41  ;;  %v1289_v49 = vpop.f32.mrf.mxu1  ;;  %v4474_v16 = vpop.f32.mrf.mxu2 }
 0x1ce   : > { %v1367_v40 = vadd.f32 %v1289_v49, %v4020_v5 }
 0x1cf   : > { %1854 = vst [vmem:[%s4364_s9 + $0x58] sm:$0xff] %v4451_v9  ;;  %v4465_v47 = vpack.c.bf16 %v4451_v9, %v4438_v59 }
 0x1d0   : > { %3270 = vmatmul.msk.bf16.gmra.mxu1 %vm447_vm0, %v4456_v7  ;;  %v562_v41 = vpop.f32.mrf.mxu0 }
 0x1d1   : > { %3398 = vmatmul.msk.bf16.gmra.mxu3 %vm447_vm0, %v3477_v0  ;;  %v4472_v26 = vadd.f32 %v4325_v1, %v562_v41 }
 0x1d3   : > { %5559 = vst [vmem:[#allocation31_spill] sm:$0xff] %v4472_v26  ;;  %3245 = vmatmul.msk.bf16.gmra.mxu0 %vm447_vm0, %v4170_v30  ;;  %v4494_v30 = vld [vmem:[%s5534_s1 + $0x160] sm:$0xff] }
 0x1d4   : > { %v1714_v44 = vpop.f32.mrf.mxu3  ;;  %5561 = vst [vmem:[#allocation33_spill] sm:$0xff] %v4494_v30 }
 0x1d5   : > { %v4476_v2 = vadd.f32 %v1714_v44, %v1367_v40  ;;  %v1291_v61 = vpop.f32.mrf.mxu1  ;;  %v4486_v1 = vpop.f32.mrf.mxu2  ;;  %3381 = vmatmul.msk.bf16.gmra.mxu2 %vm447_vm0, %v3476_v55 }
 0x1d6   : > { %v1369_v10 = vadd.f32 %v1291_v61, %v4025_v8  ;;  %v3478_v8 = vld [vmem:[%s5534_s1 + $0x1e0] sm:$0xff] }
 0x1d7   : > { %1856 = vst [vmem:[%s4364_s9 + $0x68] sm:$0xff] %v4476_v2 }
 0x1d8   : > { %v564_v36 = vpop.f32.mrf.mxu0 }
 0x1d9   : > { %v4484_v5 = vadd.f32 %v4334_v4, %v564_v36 }
 0x1db   : > { %5560 = vst [vmem:[#allocation32_spill] sm:$0xff] %v4484_v5 }
 0x1dc   : > { %v1716_v49 = vpop.f32.mrf.mxu3 }
 0x1dd   : > { %v4489_v41 = vadd.f32 %v1716_v49, %v1369_v10  ;;  %v1294_v61 = vpop.f32.mrf.mxu1  ;;  %v4512_v40 = vpop.f32.mrf.mxu2 }
 0x1de   : > { %v1371_v55 = vadd.f32 %v1294_v61, %v4038_v14 }
 0x1df   : > { %1858 = vst [vmem:[%s4364_s9 + $0x78] sm:$0xff] %v4489_v41  ;;  %v4503_v4 = vpack.c.bf16 %v4489_v41, %v4476_v2 }
 0x1e0   : > { %3271 = vmatmul.msk.bf16.gmra.mxu1 %vm447_vm0, %v4494_v30  ;;  %v567_v10 = vpop.f32.mrf.mxu0 }
 0x1e1   : > { %3399 = vmatmul.msk.bf16.gmra.mxu3 %vm447_vm0, %v3478_v8  ;;  %v4510_v36 = vadd.f32 %v4358_v3, %v567_v10 }
 0x1e3   : > { %5562 = vst [vmem:[#allocation34_spill] sm:$0xff] %v4510_v36  ;;  %3246 = vmatmul.msk.bf16.gmra.mxu0 %vm447_vm0, %v4198_v15  ;;  %v4532_v15 = vld [vmem:[%s5534_s1 + $0x168] sm:$0xff] }
 0x1e4   : > { %v1719_v44 = vpop.f32.mrf.mxu3 }
 0x1e5   : > { %v4514_v49 = vadd.f32 %v1719_v44, %v1371_v55  ;;  %v1296_v5 = vpop.f32.mrf.mxu1  ;;  %v4524_v3 = vpop.f32.mrf.mxu2  ;;  %3382 = vmatmul.msk.bf16.gmra.mxu2 %vm447_vm0, %v3477_v0 }
 0x1e6   : > { %v1373_v30 = vadd.f32 %v1296_v5, %v4043_v17  ;;  %5564 = vst [vmem:[#allocation36_spill] sm:$0xff] %v4524_v3  ;;  %v3479_v17 = vld [vmem:[%s5534_s1 + $0x1e8] sm:$0xff] }
 0x1e7   : > { %1860 = vst [vmem:[%s4364_s9 + $0x88] sm:$0xff] %v4514_v49 }
 0x1e8   : > { %v569_v26 = vpop.f32.mrf.mxu0 }
 0x1e9   : > { %v4522_v14 = vadd.f32 %v4372_v13, %v569_v26 }
 0x1eb   : > { %5563 = vst [vmem:[#allocation35_spill] sm:$0xff] %v4522_v14 }
 0x1ec   : > { %v1721_v61 = vpop.f32.mrf.mxu3 }
 0x1ed   : > { %v4527_v10 = vadd.f32 %v1721_v61, %v1373_v30  ;;  %v1299_v5 = vpop.f32.mrf.mxu1  ;;  %v4550_v55 = vpop.f32.mrf.mxu2 }
 0x1ee   : > { %v1375_v26 = vadd.f32 %v1299_v5, %v4058_v29 }
 0x1ef   : > { %1862 = vst [vmem:[%s4364_s9 + $0x98] sm:$0xff] %v4527_v10  ;;  %v4541_v13 = vpack.c.bf16 %v4527_v10, %v4514_v49 }
 0x1f0   : > { %3272 = vmatmul.msk.bf16.gmra.mxu1 %vm447_vm0, %v4532_v15  ;;  %v572_v0 = vpop.f32.mrf.mxu0 }
 0x1f1   : > { %3400 = vmatmul.msk.bf16.gmra.mxu3 %vm447_vm0, %v3479_v17  ;;  %v4548_v30 = vadd.f32 %v4398_v34, %v572_v0 }
 0x1f3   : > { %5565 = vst [vmem:[#allocation37_spill] sm:$0xff] %v4548_v30  ;;  %3247 = vmatmul.msk.bf16.gmra.mxu0 %vm447_vm0, %v4226_v52  ;;  %v4570_v52 = vld [vmem:[%s5534_s1 + $0x170] sm:$0xff] }
 0x1f4   : > { %v1724_v44 = vpop.f32.mrf.mxu3  ;;  %5567 = vst [vmem:[#allocation39_spill] sm:$0xff] %v4570_v52 }
 0x1f5   : > { %v4552_v61 = vadd.f32 %v1724_v44, %v1375_v26  ;;  %v1301_v3 = vpop.f32.mrf.mxu1  ;;  %v4562_v34 = vpop.f32.mrf.mxu2  ;;  %3383 = vmatmul.msk.bf16.gmra.mxu2 %vm447_vm0, %v3478_v8 }
 0x1f6   : > { %v1377_v36 = vadd.f32 %v1301_v3, %v4065_v35  ;;  %v3480_v35 = vld [vmem:[%s5534_s1 + $0x1f0] sm:$0xff] }
 0x1f7   : > { %1864 = vst [vmem:[%s4364_s9 + $0xa8] sm:$0xff] %v4552_v61 }
 0x1f8   : > { %v574_v14 = vpop.f32.mrf.mxu0 }
 0x1f9   : > { %v4560_v29 = vadd.f32 %v4410_v28, %v574_v14 }
 0x1fb   : > { %5566 = vst [vmem:[#allocation38_spill] sm:$0xff] %v4560_v29 }
 0x1fc   : > { %v1726_v5 = vpop.f32.mrf.mxu3 }
 0x1fd   : > { %v4565_v0 = vadd.f32 %v1726_v5, %v1377_v36  ;;  %v1304_v3 = vpop.f32.mrf.mxu1  ;;  %v4588_v26 = vpop.f32.mrf.mxu2 }
 0x1fe   : > { %v1379_v36 = vadd.f32 %v1304_v3, %v4082_v43 }
 0x1ff   : > { %1866 = vst [vmem:[%s4364_s9 + $0xb8] sm:$0xff] %v4565_v0  ;;  %v4579_v28 = vpack.c.bf16 %v4565_v0, %v4552_v61 }
 0x200   : > { %3273 = vmatmul.msk.bf16.gmra.mxu1 %vm447_vm0, %v4570_v52  ;;  %v577_v8 = vpop.f32.mrf.mxu0 }
 0x201   : > { %3401 = vmatmul.msk.bf16.gmra.mxu3 %vm447_vm0, %v3480_v35  ;;  %v4586_v14 = vadd.f32 %v4436_v27, %v577_v8 }
 0x203   : > { %5568 = vst [vmem:[#allocation40_spill] sm:$0xff] %v4586_v14  ;;  %3248 = vmatmul.msk.bf16.gmra.mxu0 %vm447_vm0, %v4254_v38  ;;  %v4608_v38 = vld [vmem:[%s5534_s1 + $0x178] sm:$0xff] }
 0x204   : > { %v1729_v44 = vpop.f32.mrf.mxu3  ;;  %5570 = vst [vmem:[#allocation42_spill] sm:$0xff] %v4608_v38 }
 0x205   : > { %v4590_v5 = vadd.f32 %v1729_v44, %v1379_v36  ;;  %v1306_v29 = vpop.f32.mrf.mxu1  ;;  %v4600_v3 = vpop.f32.mrf.mxu2  ;;  %3384 = vmatmul.msk.bf16.gmra.mxu2 %vm447_vm0, %v3479_v17 }
 0x206   : > { %v1381_v52 = vadd.f32 %v1306_v29, %v4089_v19  ;;  %v3481_v19 = vld [vmem:[%s5534_s1 + $0x1f8] sm:$0xff] }
 0x207   : > { %1868 = vst [vmem:[%s4364_s9 + $0xc8] sm:$0xff] %v4590_v5 }
 0x208   : > { %v579_v30 = vpop.f32.mrf.mxu0 }
 0x209   : > { %v4598_v43 = vadd.f32 %v4448_v45, %v579_v30 }
 0x20b   : > { %5569 = vst [vmem:[#allocation41_spill] sm:$0xff] %v4598_v43 }
 0x20c   : > { %v1731_v27 = vpop.f32.mrf.mxu3 }
 0x20d   : > { %v4603_v8 = vadd.f32 %v1731_v27, %v1381_v52  ;;  %v1309_v29 = vpop.f32.mrf.mxu1  ;;  %v4626_v44 = vpop.f32.mrf.mxu2 }
 0x20e   : > { %v1383_v30 = vadd.f32 %v1309_v29, %v4104_v51 }
 0x20f   : > { %1870 = vst [vmem:[%s4364_s9 + $0xd8] sm:$0xff] %v4603_v8  ;;  %v4617_v45 = vpack.c.bf16 %v4603_v8, %v4590_v5 }
 0x210   : > { %3274 = vmatmul.msk.bf16.gmra.mxu1 %vm447_vm0, %v4608_v38  ;;  %v582_v17 = vpop.f32.mrf.mxu0 }
 0x211   : > { %3402 = vmatmul.msk.bf16.gmra.mxu3 %vm447_vm0, %v3481_v19  ;;  %v4624_v52 = vadd.f32 %v4474_v16, %v582_v17 }
 0x213   : > { %5571 = vst [vmem:[#allocation43_spill] sm:$0xff] %v4624_v52  ;;  %3249 = vmatmul.msk.bf16.gmra.mxu0 %vm447_vm0, %v4286_v53 }
 0x214   : > { %v1734_v36 = vpop.f32.mrf.mxu3 }
 0x215   : > { %v4628_v27 = vadd.f32 %v1734_v36, %v1383_v30  ;;  %v1311_v43 = vpop.f32.mrf.mxu1  ;;  %v4640_v17 = vpop.f32.mrf.mxu2  ;;  %3385 = vmatmul.msk.bf16.gmra.mxu2 %vm447_vm0, %v3480_v35 }
 0x216   : > { %v1385_v38 = vadd.f32 %v1311_v43, %v4111_v57 }
 0x217   : > { %1872 = vst [vmem:[%s4364_s9 + $0xe8] sm:$0xff] %v4628_v27 }
 0x218   : > { %v584_v14 = vpop.f32.mrf.mxu0 }
 0x219   : > { %v4636_v51 = vadd.f32 %v4486_v1, %v584_v14 }
 0x21b   : > { %5572 = vst [vmem:[#allocation44_spill] sm:$0xff] %v4636_v51 }
 0x21c   : > { %v1736_v29 = vpop.f32.mrf.mxu3 }
 0x21d   : > { %v4638_v16 = vadd.f32 %v1736_v29, %v1385_v38  ;;  %v1314_v30 = vpop.f32.mrf.mxu1  ;;  %v4657_v35 = vpop.f32.mrf.mxu2  ;;  %v1908_v29 = vmul.f32 %v4360_v25, %v4360_v25  ;;  %v1910_v25 = vmul.f32 %v4375_v18, %v4375_v18 }
 0x21e   : > { %v1387_v1 = vadd.f32 %v1314_v30, %v4126_v63 }
 0x21f   : > { %1874 = vst [vmem:[%s4364_s9 + $0xf8] sm:$0xff] %v4638_v16  ;;  %v4647_v53 = vpack.c.bf16 %v4638_v16, %v4628_v27 }
 0x220   : > { %v587_v57 = vpop.f32.mrf.mxu0 }
 0x221   : > { %2486 = vmatpush.bf16.msra.mxu2 %v4647_v53  ;;  %v4652_v14 = vadd.f32 %v4512_v40, %v587_v57 }
 0x223   : > { %5573 = vst [vmem:[#allocation45_spill] sm:$0xff] %v4652_v14  ;;  %3250 = vmatmul.msk.bf16.gmra.mxu0 %vm447_vm0, %v4314_v50 }
 0x224   : > { %v1739_v43 = vpop.f32.mrf.mxu3 }
 0x225   : > { %v1812_v38 = vadd.f32 %v1739_v43, %v1387_v1  ;;  %2487 = vmatpush.bf16.msra.mxu2 %v4617_v45  ;;  %v1316_v36 = vpop.f32.mrf.mxu1  ;;  %v4670_v1 = vpop.f32.mrf.mxu2 }
 0x226   : > { %v1389_v50 = vadd.f32 %v1316_v36, %v4133_v6  ;;  %3386 = vmatmul.msk.bf16.gmra.mxu2 %vm447_vm0, %v3481_v19 }
 0x227   : > { %1876 = vst [vmem:[%s4364_s9 + $0x108] sm:$0xff] %v1812_v38  ;;  %v1940_v51 = vmul.f32 %v1812_v38, %v1812_v38 }
 0x228   : > { %v4665_v40 = vpop.f32.mrf.mxu0 }
 0x229   : > { %v4662_v63 = vadd.f32 %v1940_v51, %v1908_v29  ;;  %2488 = vmatpush.bf16.msra.mxu2 %v4579_v28  ;;  %5574 = vst [vmem:[#allocation46_spill] sm:$0xff] %v4665_v40 }
 0x22b   : > { %3558 = vrsqrt.f32 %v4662_v63  ;;  %vm2022_vm6 = vcmp.eq.f32.partialorder %v4662_v63, inf  ;;  %vm2024_vm7 = vcmp.eq.f32.partialorder %v4662_v63, 0.0 }
 0x22c   : > { %v1741_v30 = vpop.f32.mrf.mxu3 }
 0x22d   : > { %v1814_v57 = vadd.f32 %v1741_v30, %v1389_v50  ;;  %2489 = vmatpush.bf16.msra.mxu2 %v4541_v13  ;;  %v1319_v43 = vpop.f32.mrf.mxu1 }
 0x22e   : > { %v1391_v19 = vadd.f32 %v1319_v43, %v4154_v37  ;;  %v1912_v37 = vmul.f32 %v4400_v60, %v4400_v60 }
 0x22f   : > { %1878 = vst [vmem:[%s4364_s9 + $0x118] sm:$0xff] %v1814_v57  ;;  %v1942_v51 = vmul.f32 %v1814_v57, %v1814_v57  ;;  %v4676_v29 = vpack.c.bf16 %v1814_v57, %v1812_v38  ;;  %v4688_v57 = vpop.f32.mrf.mxu2 }
 0x230   : > { %v1185_v36 = vpop.f32.mrf.mxu0 }
 0x231   : > { %v3559_v40 = vpop.eup %3558  ;;  %v4678_v14 = vadd.f32 %v1942_v51, %v1910_v25  ;;  %2490 = vmatpush.bf16.msra.mxu2 %v4503_v4  ;;  %v1354_v18 = vadd.f32 %v1185_v36, %v4148_v23 }
 0x232   : > { %v2016_v6 = vmul.f32 %v3559_v40, %v4662_v63 }
 0x233   : > { %3560 = vrsqrt.f32 %v4678_v14  ;;  %3251 = vmatmul.msk.bf16.gmra.mxu0 %vm447_vm0, %v4342_v56  ;;  %v4691_v51 = vadd.f32 %v4550_v55, %v1354_v18  ;;  %vm2046_vm8 = vcmp.eq.f32.partialorder %v4678_v14, inf  ;;  %vm2048_vm9 = vcmp.eq.f32.partialorder %v4678_v14, 0.0 }
 0x234   : > { %v2017_v50 = vmul.f32 %v3559_v40, %v2016_v6  ;;  %v1744_v30 = vpop.f32.mrf.mxu3 }
 0x235   : > { %v1816_v38 = vadd.f32 %v1744_v30, %v1391_v19  ;;  %2491 = vmatpush.bf16.msra.mxu2 %v4465_v47  ;;  %v1321_v52 = vpop.f32.mrf.mxu1  ;;  %1843 = vst [vmem:[%s4364_s9] sm:$0xff] %v4691_v51 }
 0x236   : > { %v2018_v25 = vmul.f32 0.5, %v2017_v50  ;;  %v1393_v50 = vadd.f32 %v1321_v52, %v4165_v48 }
 0x237   : > { %1880 = vst [vmem:[%s4364_s9 + $0x128] sm:$0xff] %v1816_v38  ;;  %v1944_v23 = vmul.f32 %v1816_v38, %v1816_v38 }
 0x238   : > { %v2019_v43 = vsub.f32 1.5, %v2018_v25  ;;  %v1187_v55 = vpop.f32.mrf.mxu0 }
 0x239   : > { %v3561_v6 = vpop.eup %3560  ;;  %v4698_v36 = vadd.f32 %v1944_v23, %v1912_v37  ;;  %2492 = vmatpush.bf16.msra.mxu2 %v4427_v32  ;;  %v1356_v30 = vadd.f32 %v1187_v55, %v4160_v20  ;;  %v2025_v37 = vand.u32 2147483648, %v4662_v63 }
 0x23a   : > { %v2020_v56 = vmul.f32 %v3559_v40, %v2019_v43  ;;  %v2040_v19 = vmul.f32 %v3561_v6, %v4678_v14  ;;  %v4710_v40 = vld.sshfl [vmem:[#allocation1] sm:$0xff pattern:$0x73625140] }
 0x23b   : > { %3562 = vrsqrt.f32 %v4698_v36  ;;  %v4715_v52 = vadd.f32 %v4562_v34, %v1356_v30  ;;  %vm2070_vm10 = vcmp.eq.f32.partialorder %v4698_v36, inf  ;;  %vm2072_vm11 = vcmp.eq.f32.partialorder %v4698_v36, 0.0 }
 0x23c   : > { %v2021_v60 = vmul.f32 %v2020_v56, %v4662_v63  ;;  %v2041_v18 = vmul.f32 %v3561_v6, %v2040_v19  ;;  %v1746_v25 = vpop.f32.mrf.mxu3  ;;  %v4718_v56 = vpop.f32.mrf.mxu2  ;;  %v1914_v19 = vmul.f32 %v4413_v21, %v4413_v21 }
 0x23d   : > { %v1818_v23 = vadd.f32 %v1746_v25, %v1393_v50  ;;  %2493 = vmatpush.bf16.msra.mxu2 %v4389_v31  ;;  %v1324_v20 = vpop.f32.mrf.mxu1  ;;  %v4731_v34 = vpack.c.bf16 %v4715_v52, %v4691_v51  ;;  %1845 = vst [vmem:[%s4364_s9 + $0x10] sm:$0xff] %v4715_v52 }
 0x23e   : > { %v2023_v43 = vsel %vm2022_vm6, %v4662_v63, %v2021_v60  ;;  %v2042_v48 = vmul.f32 0.5, %v2041_v18 }
 0x23f   : > { %v2026_v55 = vsel %vm2024_vm7, %v2025_v37, %v2023_v43  ;;  %1882 = vst [vmem:[%s4364_s9 + $0x138] sm:$0xff] %v1818_v23  ;;  %v1946_v50 = vmul.f32 %v1818_v23, %v1818_v23  ;;  %v4723_v25 = vpack.c.bf16 %v1818_v23, %v1816_v38  ;;  %v1395_v37 = vadd.f32 %v1324_v20, %v4183_v62 }
 0x240   : > { %2388 = vst [vmem:[%s4725_s15 + $0x8] sm:$0xff] %v2026_v55  ;;  %v2043_v63 = vsub.f32 1.5, %v2042_v48  ;;  %2494 = vmatmul.bf16.vlgmr.msra.gmra.mxu2 %v4710_v40  ;;  %v1190_v30 = vpop.f32.mrf.mxu0 }
 0x241   : > { %2551 = vmatpush.bf16.msrb.mxu2 %v4647_v53  ;;  %v3563_v60 = vpop.eup %3562  ;;  %v4735_v21 = vadd.f32 %v1946_v50, %v1914_v19  ;;  %v1358_v48 = vadd.f32 %v1190_v30, %v4179_v54 }
 0x242   : > { %v2044_v18 = vmul.f32 %v3561_v6, %v2043_v63  ;;  %v2064_v38 = vmul.f32 %v3563_v60, %v4698_v36  ;;  %v2049_v6 = vand.u32 2147483648, %v4678_v14  ;;  %v1916_v63 = vmul.f32 %v4438_v59, %v4438_v59 }
 0x243   : > { %3564 = vrsqrt.f32 %v4735_v21  ;;  %3252 = vmatmul.msk.bf16.gmra.mxu0 %vm447_vm0, %v4380_v46  ;;  %v4750_v20 = vadd.f32 %v4588_v26, %v1358_v48  ;;  %vm2094_vm12 = vcmp.eq.f32.partialorder %v4735_v21, inf  ;;  %vm2096_vm13 = vcmp.eq.f32.partialorder %v4735_v21, 0.0 }
 0x244   : > { %v2045_v23 = vmul.f32 %v2044_v18, %v4678_v14  ;;  %v2065_v43 = vmul.f32 %v3563_v60, %v2064_v38  ;;  %v1749_v55 = vpop.f32.mrf.mxu3 }
 0x245   : > { %2552 = vmatpush.bf16.msrb.mxu2 %v4617_v45  ;;  %v1820_v19 = vadd.f32 %v1749_v55, %v1395_v37  ;;  %v1326_v54 = vpop.f32.mrf.mxu1  ;;  %1847 = vst [vmem:[%s4364_s9 + $0x20] sm:$0xff] %v4750_v20 }
 0x246   : > { %v2047_v50 = vsel %vm2046_vm8, %v4678_v14, %v2045_v23  ;;  %v2066_v62 = vmul.f32 0.5, %v2065_v43  ;;  %v1397_v59 = vadd.f32 %v1326_v54, %v4193_v39 }
 0x247   : > { %v2050_v18 = vsel %vm2048_vm9, %v2049_v6, %v2047_v50  ;;  %1884 = vst [vmem:[%s4364_s9 + $0x148] sm:$0xff] %v1820_v19  ;;  %v1948_v38 = vmul.f32 %v1820_v19, %v1820_v19 }
 0x248   : > { %2390 = vst [vmem:[%s4725_s15 + $0x18] sm:$0xff] %v2050_v18  ;;  %v2067_v30 = vsub.f32 1.5, %v2066_v62  ;;  %v1192_v23 = vpop.f32.mrf.mxu0  ;;  %v1918_v18 = vmul.f32 %v4451_v9, %v4451_v9  ;;  %v2451_v9 = vld [vmem:[%s5537_s2] sm:$0xf] }
 0x249   : > { %2553 = vmatpush.bf16.msrb.mxu2 %v4579_v28  ;;  %v3565_v46 = vpop.eup %3564  ;;  %v4759_v37 = vadd.f32 %v1948_v38, %v1916_v63  ;;  %v1360_v55 = vadd.f32 %v1192_v23, %v4188_v12  ;;  %v4775_v12 = vld.sshfl [vmem:[#allocation1 + $0x8] sm:$0xff pattern:$0x73625140] }
 0x24a   : > { %v2068_v14 = vmul.f32 %v3563_v60, %v2067_v30  ;;  %v2088_v26 = vmul.f32 %v3565_v46, %v4735_v21  ;;  %v2073_v60 = vand.u32 2147483648, %v4698_v36  ;;  %2520 = vst [vmem:[#allocation1] ss:$4 sm:$0xff] %v2451_v9 }
 0x24b   : > { %3566 = vrsqrt.f32 %v4759_v37  ;;  %v4772_v39 = vadd.f32 %v4600_v3, %v1360_v55  ;;  %vm2118_vm14 = vcmp.eq.f32.partialorder %v4759_v37, inf  ;;  %vm2120_vm15 = vcmp.eq.f32.partialorder %v4759_v37, 0.0 }
 0x24c   : > { %v2069_v43 = vmul.f32 %v2068_v14, %v4698_v36  ;;  %v2089_v48 = vmul.f32 %v3565_v46, %v2088_v26  ;;  %v1751_v6 = vpop.f32.mrf.mxu3 }
 0x24d   : > { %2554 = vmatpush.bf16.msrb.mxu2 %v4541_v13  ;;  %v1822_v50 = vadd.f32 %v1751_v6, %v1397_v59  ;;  %v1329_v54 = vpop.f32.mrf.mxu1  ;;  %1849 = vst [vmem:[%s4364_s9 + $0x30] sm:$0xff] %v4772_v39 }
 0x24e   : > { %v2071_v62 = vsel %vm2070_vm10, %v4698_v36, %v2069_v43  ;;  %v2090_v63 = vmul.f32 0.5, %v2089_v48  ;;  %v4785_v36 = vpack.c.bf16 %v4772_v39, %v4750_v20  ;;  %v4796_v48 = vpop.f32.mrf.mxu2  ;;  %v1399_v55 = vadd.f32 %v1329_v54, %v4211_v33 }
 0x24f   : > { %v2074_v38 = vsel %vm2072_vm11, %v2073_v60, %v2071_v62  ;;  %1886 = vst [vmem:[%s4364_s9 + $0x158] sm:$0xff] %v1822_v50  ;;  %v1950_v30 = vmul.f32 %v1822_v50, %v1822_v50  ;;  %v4780_v14 = vpack.c.bf16 %v1822_v50, %v1820_v19  ;;  %v2097_v62 = vand.u32 2147483648, %v4735_v21 }
 0x250   : > { %2392 = vst [vmem:[%s4725_s15 + $0x28] sm:$0xff] %v2074_v38  ;;  %v2091_v26 = vsub.f32 1.5, %v2090_v63  ;;  %v1195_v19 = vpop.f32.mrf.mxu0  ;;  %v1920_v38 = vmul.f32 %v4476_v2, %v4476_v2 }
 0x251   : > { %2555 = vmatpush.bf16.msrb.mxu2 %v4503_v4  ;;  %v3567_v3 = vpop.eup %3566  ;;  %v4789_v23 = vadd.f32 %v1950_v30, %v1918_v18  ;;  %v1362_v50 = vadd.f32 %v1195_v19, %v4207_v11  ;;  %v4822_v19 = vld.sshfl [vmem:[#allocation1] sm:$0xff pattern:$0x73625140] }
 0x252   : > { %v2092_v59 = vmul.f32 %v3565_v46, %v2091_v26  ;;  %v2112_v43 = vmul.f32 %v3567_v3, %v4759_v37 }
 0x253   : > { %3568 = vrsqrt.f32 %v4789_v23  ;;  %3253 = vmatmul.msk.bf16.gmra.mxu0 %vm447_vm0, %v4418_v58  ;;  %v4809_v54 = vadd.f32 %v4626_v44, %v1362_v50  ;;  %vm2142_vm1 = vcmp.eq.f32.partialorder %v4789_v23, inf  ;;  %vm2144_vm2 = vcmp.eq.f32.partialorder %v4789_v23, 0.0 }
 0x254   : > { %v2093_v6 = vmul.f32 %v2092_v59, %v4735_v21  ;;  %v2113_v60 = vmul.f32 %v3567_v3, %v2112_v43  ;;  %v1754_v46 = vpop.f32.mrf.mxu3 }
 0x255   : > { %2556 = vmatpush.bf16.msrb.mxu2 %v4465_v47  ;;  %v1824_v63 = vadd.f32 %v1754_v46, %v1399_v55  ;;  %v1331_v11 = vpop.f32.mrf.mxu1  ;;  %1851 = vst [vmem:[%s4364_s9 + $0x40] sm:$0xff] %v4809_v54  ;;  %v2121_v46 = vand.u32 2147483648, %v4759_v37 }
 0x256   : > { %v2095_v18 = vsel %vm2094_vm12, %v4735_v21, %v2093_v6  ;;  %v2114_v33 = vmul.f32 0.5, %v2113_v60  ;;  %v1401_v2 = vadd.f32 %v1331_v11, %v4221_v24  ;;  %v4827_v55 = vpop.f32.mrf.mxu2 }
 0x257   : > { %v2098_v30 = vsel %vm2096_vm13, %v2097_v62, %v2095_v18  ;;  %1888 = vst [vmem:[%s4364_s9 + $0x168] sm:$0xff] %v1824_v63  ;;  %v1952_v26 = vmul.f32 %v1824_v63, %v1824_v63 }
 0x258   : > { %2394 = vst [vmem:[%s4725_s15 + $0x38] sm:$0xff] %v2098_v30  ;;  %v2115_v9 = vsub.f32 1.5, %v2114_v33  ;;  %v1197_v43 = vpop.f32.mrf.mxu0 }
 0x259   : > { %2557 = vmatpush.bf16.msrb.mxu2 %v4427_v32  ;;  %v3569_v58 = vpop.eup %3568  ;;  %v4818_v59 = vadd.f32 %v1952_v26, %v1920_v38 }
 0x25a   : > { %v2116_v21 = vmul.f32 %v3567_v3, %v2115_v9  ;;  %v2136_v44 = vmul.f32 %v3569_v58, %v4789_v23  ;;  %v1364_v3 = vadd.f32 %v1197_v43, %v4216_v42  ;;  %v1922_v42 = vmul.f32 %v4489_v41, %v4489_v41 }
 0x25b   : > { %3570 = vrsqrt.f32 %v4818_v59  ;;  %vm2166_vm3 = vcmp.eq.f32.partialorder %v4818_v59, inf  ;;  %vm2168_vm4 = vcmp.eq.f32.partialorder %v4818_v59, 0.0 }
 0x25c   : > { %v2117_v6 = vmul.f32 %v2116_v21, %v4759_v37  ;;  %v2137_v60 = vmul.f32 %v3569_v58, %v2136_v44  ;;  %v1756_v50 = vpop.f32.mrf.mxu3  ;;  %v4837_v33 = vadd.f32 %v4640_v17, %v1364_v3  ;;  %v5576_v3 = vld [vmem:[#allocation10_spill] sm:$0xff] }
 0x25d   : > { %2558 = vmatpush.bf16.msrb.mxu2 %v4389_v31  ;;  %v1826_v62 = vadd.f32 %v1756_v50, %v1401_v2  ;;  %v1334_v11 = vpop.f32.mrf.mxu1 }
 0x25e   : > { %v2119_v24 = vsel %vm2118_vm14, %v4759_v37, %v2117_v6  ;;  %v2138_v18 = vmul.f32 0.5, %v2137_v60  ;;  %v4848_v37 = vpack.c.bf16 %v4837_v33, %v4809_v54  ;;  %1853 = vst [vmem:[%s4364_s9 + $0x50] sm:$0xff] %v4837_v33 }
 0x25f   : > { %v2122_v38 = vsel %vm2120_vm15, %v2121_v46, %v2119_v24  ;;  %1890 = vst [vmem:[%s4364_s9 + $0x178] sm:$0xff] %v1826_v62  ;;  %v1954_v30 = vmul.f32 %v1826_v62, %v1826_v62  ;;  %v4842_v26 = vpack.c.bf16 %v1826_v62, %v1824_v63  ;;  %v5575_v63 = vld [vmem:[#allocation11_spill] sm:$0xff] }
 0x260   : > { %2559 = vmatmul.bf16.vlgmr.msrb.gmra.mxu2 %v4822_v19  ;;  %2396 = vst [vmem:[%s4725_s15 + $0x48] sm:$0xff] %v2122_v38  ;;  %v2139_v9 = vsub.f32 1.5, %v2138_v18  ;;  %v1200_v43 = vpop.f32.mrf.mxu0  ;;  %v1403_v2 = vadd.f32 %v1334_v11, %v5575_v63  ;;  %v1924_v38 = vmul.f32 %v4514_v49, %v4514_v49  ;;  %v5577_v63 = vld [vmem:[#allocation13_spill] sm:$0xff] }
 0x261   : > { %2611 = vmatpush.bf16.msra.mxu2 %v4647_v53  ;;  %v3571_v21 = vpop.eup %3570  ;;  %v4852_v17 = vadd.f32 %v1954_v30, %v1922_v42  ;;  %v1366_v50 = vadd.f32 %v1200_v43, %v5576_v3 }
 0x262   : > { %v2140_v44 = vmul.f32 %v3569_v58, %v2139_v9  ;;  %v2160_v41 = vmul.f32 %v3571_v21, %v4818_v59  ;;  %v2145_v58 = vand.u32 2147483648, %v4789_v23 }
 0x263   : > { %3572 = vrsqrt.f32 %v4852_v17  ;;  %3254 = vmatmul.msk.bf16.gmra.mxu0 %vm447_vm0, %v4456_v7  ;;  %v4867_v11 = vadd.f32 %v4657_v35, %v1366_v50  ;;  %vm2190_vm5 = vcmp.eq.f32.partialorder %v4852_v17, inf  ;;  %vm2192_vm6 = vcmp.eq.f32.partialorder %v4852_v17, 0.0 }
 0x264   : > { %v2141_v6 = vmul.f32 %v2140_v44, %v4789_v23  ;;  %v2161_v60 = vmul.f32 %v3571_v21, %v2160_v41  ;;  %v1759_v46 = vpop.f32.mrf.mxu3 }
 0x265   : > { %2612 = vmatpush.bf16.msra.mxu2 %v4617_v45  ;;  %v1828_v62 = vadd.f32 %v1759_v46, %v1403_v2  ;;  %v1336_v42 = vpop.f32.mrf.mxu1  ;;  %1855 = vst [vmem:[%s4364_s9 + $0x60] sm:$0xff] %v4867_v11 }
 0x266   : > { %v2143_v24 = vsel %vm2142_vm1, %v4789_v23, %v2141_v6  ;;  %v2162_v18 = vmul.f32 0.5, %v2161_v60  ;;  %v1405_v49 = vadd.f32 %v1336_v42, %v5577_v63  ;;  %v5578_v60 = vld [vmem:[#allocation12_spill] sm:$0xff] }
 0x267   : > { %v2146_v30 = vsel %vm2144_vm2, %v2145_v58, %v2143_v24  ;;  %1892 = vst [vmem:[%s4364_s9 + $0x188] sm:$0xff] %v1828_v62  ;;  %v1956_v9 = vmul.f32 %v1828_v62, %v1828_v62 }
 0x268   : > { %2398 = vst [vmem:[%s4725_s15 + $0x58] sm:$0xff] %v2146_v30  ;;  %v2163_v44 = vsub.f32 1.5, %v2162_v18  ;;  %v1202_v43 = vpop.f32.mrf.mxu0 }
 0x269   : > { %2613 = vmatpush.bf16.msra.mxu2 %v4579_v28  ;;  %v3573_v7 = vpop.eup %3572  ;;  %v4876_v41 = vadd.f32 %v1956_v9, %v1924_v38  ;;  %v1368_v3 = vadd.f32 %v1202_v43, %v5578_v60  ;;  %v1926_v38 = vmul.f32 %v4527_v10, %v4527_v10  ;;  %v5579_v60 = vld [vmem:[#allocation14_spill] sm:$0xff] }
 0x26a   : > { %v2164_v23 = vmul.f32 %v3571_v21, %v2163_v44  ;;  %v2184_v35 = vmul.f32 %v3573_v7, %v4852_v17  ;;  %v2169_v21 = vand.u32 2147483648, %v4818_v59 }
 0x26b   : > { %3574 = vrsqrt.f32 %v4876_v41  ;;  %v4889_v18 = vadd.f32 %v4670_v1, %v1368_v3  ;;  %vm2214_vm7 = vcmp.eq.f32.partialorder %v4876_v41, inf  ;;  %vm2216_vm8 = vcmp.eq.f32.partialorder %v4876_v41, 0.0 }
 0x26c   : > { %v2165_v2 = vmul.f32 %v2164_v23, %v4818_v59  ;;  %v2185_v6 = vmul.f32 %v3573_v7, %v2184_v35  ;;  %v1761_v50 = vpop.f32.mrf.mxu3  ;;  %v4896_v23 = vpop.f32.mrf.mxu2 }
 0x26d   : > { %2614 = vmatpush.bf16.msra.mxu2 %v4541_v13  ;;  %v1830_v46 = vadd.f32 %v1761_v50, %v1405_v49  ;;  %v1339_v42 = vpop.f32.mrf.mxu1  ;;  %1857 = vst [vmem:[%s4364_s9 + $0x70] sm:$0xff] %v4889_v18 }
 0x26e   : > { %v2167_v58 = vsel %vm2166_vm3, %v4818_v59, %v2165_v2  ;;  %v2186_v24 = vmul.f32 0.5, %v2185_v6  ;;  %v4902_v59 = vpack.c.bf16 %v4889_v18, %v4867_v11  ;;  %v1407_v49 = vadd.f32 %v1339_v42, %v4267_v22 }
 0x26f   : > { %v2170_v30 = vsel %vm2168_vm4, %v2169_v21, %v2167_v58  ;;  %1894 = vst [vmem:[%s4364_s9 + $0x198] sm:$0xff] %v1830_v46  ;;  %v1958_v9 = vmul.f32 %v1830_v46, %v1830_v46  ;;  %v4894_v44 = vpack.c.bf16 %v1830_v46, %v1828_v62  ;;  %v5580_v46 = vld [vmem:[#allocation33_spill] sm:$0xff] }
 0x270   : > { %2400 = vst [vmem:[%s4725_s15 + $0x68] sm:$0xff] %v2170_v30  ;;  %v2187_v35 = vsub.f32 1.5, %v2186_v24  ;;  %v1205_v62 = vpop.f32.mrf.mxu0 }
 0x271   : > { %2615 = vmatpush.bf16.msra.mxu2 %v4503_v4  ;;  %v3575_v1 = vpop.eup %3574  ;;  %v4906_v43 = vadd.f32 %v1958_v9, %v1926_v38  ;;  %v1370_v3 = vadd.f32 %v1205_v62, %v5579_v60  ;;  %v1928_v38 = vmul.f32 %v4552_v61, %v4552_v61 }
 0x272   : > { %v2188_v10 = vmul.f32 %v3573_v7, %v2187_v35  ;;  %v2208_v63 = vmul.f32 %v3575_v1, %v4876_v41  ;;  %v2193_v7 = vand.u32 2147483648, %v4852_v17 }
 0x273   : > { %3576 = vrsqrt.f32 %v4906_v43  ;;  %3255 = vmatmul.msk.bf16.gmra.mxu0 %vm447_vm0, %v5580_v46  ;;  %v4921_v24 = vadd.f32 %v4688_v57, %v1370_v3  ;;  %v5582_v3 = vld [vmem:[#allocation15_spill] sm:$0xff]  ;;  %vm2238_vm9 = vcmp.eq.f32.partialorder %v4906_v43, inf  ;;  %vm2240_vm10 = vcmp.eq.f32.partialorder %v4906_v43, 0.0 }
 0x274   : > { %v2189_v2 = vmul.f32 %v2188_v10, %v4852_v17  ;;  %v2209_v6 = vmul.f32 %v3575_v1, %v2208_v63  ;;  %v1764_v50 = vpop.f32.mrf.mxu3  ;;  %v4933_v57 = vpop.f32.mrf.mxu2 }
 0x275   : > { %2616 = vmatpush.bf16.msra.mxu2 %v4465_v47  ;;  %v1832_v21 = vadd.f32 %v1764_v50, %v1407_v49  ;;  %v1341_v42 = vpop.f32.mrf.mxu1  ;;  %1859 = vst [vmem:[%s4364_s9 + $0x80] sm:$0xff] %v4921_v24  ;;  %v5581_v49 = vld [vmem:[#allocation16_spill] sm:$0xff] }
 0x276   : > { %v2191_v22 = vsel %vm2190_vm5, %v4852_v17, %v2189_v2  ;;  %v2210_v58 = vmul.f32 0.5, %v2209_v6  ;;  %v1409_v2 = vadd.f32 %v1341_v42, %v5581_v49 }
 0x277   : > { %v2194_v30 = vsel %vm2192_vm6, %v2193_v7, %v2191_v22  ;;  %1896 = vst [vmem:[%s4364_s9 + $0x1a8] sm:$0xff] %v1832_v21  ;;  %v1960_v9 = vmul.f32 %v1832_v21, %v1832_v21 }
 0x278   : > { %2402 = vst [vmem:[%s4725_s15 + $0x78] sm:$0xff] %v2194_v30  ;;  %v2211_v35 = vsub.f32 1.5, %v2210_v58  ;;  %v1207_v61 = vpop.f32.mrf.mxu0 }
 0x279   : > { %2617 = vmatpush.bf16.msra.mxu2 %v4427_v32  ;;  %v3577_v10 = vpop.eup %3576  ;;  %v4930_v63 = vadd.f32 %v1960_v9, %v1928_v38  ;;  %v1372_v50 = vadd.f32 %v1207_v61, %v5582_v3  ;;  %v1930_v38 = vmul.f32 %v4565_v0, %v4565_v0  ;;  %v5584_v3 = vld [vmem:[#allocation17_spill] sm:$0xff] }
 0x27a   : > { %v2212_v17 = vmul.f32 %v3575_v1, %v2211_v35  ;;  %v2232_v62 = vmul.f32 %v3577_v10, %v4906_v43 }
 0x27b   : > { %3578 = vrsqrt.f32 %v4930_v63  ;;  %v4946_v58 = vadd.f32 %v4718_v56, %v1372_v50  ;;  %vm2262_vm11 = vcmp.eq.f32.partialorder %v4930_v63, inf  ;;  %vm2264_vm12 = vcmp.eq.f32.partialorder %v4930_v63, 0.0 }
 0x27c   : > { %v2213_v6 = vmul.f32 %v2212_v17, %v4876_v41  ;;  %v2233_v60 = vmul.f32 %v3577_v10, %v2232_v62  ;;  %v1766_v7 = vpop.f32.mrf.mxu3 }
 0x27d   : > { %2618 = vmatpush.bf16.msra.mxu2 %v4389_v31  ;;  %v1834_v1 = vadd.f32 %v1766_v7, %v1409_v2  ;;  %v1344_v42 = vpop.f32.mrf.mxu1  ;;  %1861 = vst [vmem:[%s4364_s9 + $0x90] sm:$0xff] %v4946_v58  ;;  %v4966_v2 = vpop.f32.mrf.mxu2 }
 0x27e   : > { %v2215_v46 = vsel %vm2214_vm7, %v4876_v41, %v2213_v6  ;;  %v2234_v22 = vmul.f32 0.5, %v2233_v60 }
 0x27f   : > { %1898 = vst [vmem:[%s4364_s9 + $0x1b8] sm:$0xff] %v1834_v1  ;;  %v1962_v9 = vmul.f32 %v1834_v1, %v1834_v1  ;;  %v4951_v35 = vpack.c.bf16 %v1834_v1, %v1832_v21  ;;  %v5583_v21 = vld [vmem:[#allocation18_spill] sm:$0xff] }
 0x280   : > { %v2235_v17 = vsub.f32 1.5, %v2234_v22  ;;  %v1210_v61 = vpop.f32.mrf.mxu0  ;;  %v1411_v49 = vadd.f32 %v1344_v42, %v5583_v21  ;;  %v1932_v42 = vmul.f32 %v4590_v5, %v4590_v5  ;;  %v5586_v21 = vld [vmem:[#allocation19_spill] sm:$0xff] }
 0x281   : > { %2680 = vmatpush.bf16.msrb.mxu2 %v4647_v53  ;;  %v2217_v53 = vand.u32 2147483648, %v4876_v41  ;;  %v3579_v41 = vpop.eup %3578  ;;  %v4960_v56 = vadd.f32 %v1962_v9, %v1930_v38  ;;  %v1374_v50 = vadd.f32 %v1210_v61, %v5584_v3 }
 0x282   : > { %v2236_v62 = vmul.f32 %v3577_v10, %v2235_v17  ;;  %v2256_v0 = vmul.f32 %v3579_v41, %v4930_v63 }
 0x283   : > { %v2218_v30 = vsel %vm2216_vm8, %v2217_v53, %v2215_v46  ;;  %3580 = vrsqrt.f32 %v4960_v56  ;;  %3256 = vmatmul.msk.bf16.gmra.mxu0 %vm447_vm0, %v4532_v15  ;;  %v4978_v46 = vadd.f32 %v4796_v48, %v1374_v50  ;;  %vm2286_vm13 = vcmp.eq.f32.partialorder %v4960_v56, inf }
 0x284   : > { %2404 = vst [vmem:[%s4725_s15 + $0x88] sm:$0xff] %v2218_v30  ;;  %v2237_v6 = vmul.f32 %v2236_v62, %v4906_v43  ;;  %v2257_v60 = vmul.f32 %v3579_v41, %v2256_v0  ;;  %v1769_v7 = vpop.f32.mrf.mxu3  ;;  %v5585_v62 = vld [vmem:[#allocation20_spill] sm:$0xff]  ;;  %vm2288_vm14 = vcmp.eq.f32.partialorder %v4960_v56, 0.0 }
 0x285   : > { %2681 = vmatpush.bf16.msrb.mxu2 %v4617_v45  ;;  %v4956_v45 = vpack.c.bf16 %v4946_v58, %v4921_v24  ;;  %v1836_v10 = vadd.f32 %v1769_v7, %v1411_v49  ;;  %v1346_v22 = vpop.f32.mrf.mxu1  ;;  %1863 = vst [vmem:[%s4364_s9 + $0xa0] sm:$0xff] %v4978_v46 }
 0x286   : > { %v2239_v53 = vsel %vm2238_vm9, %v4906_v43, %v2237_v6  ;;  %v2258_v1 = vmul.f32 0.5, %v2257_v60  ;;  %v1413_v5 = vadd.f32 %v1346_v22, %v5585_v62  ;;  %v4997_v60 = vpop.f32.mrf.mxu2  ;;  %v5588_v62 = vld [vmem:[#allocation21_spill] sm:$0xff] }
 0x287   : > { %1900 = vst [vmem:[%s4364_s9 + $0x1c8] sm:$0xff] %v1836_v10  ;;  %v1964_v30 = vmul.f32 %v1836_v10, %v1836_v10 }
 0x288   : > { %v1212_v17 = vpop.f32.mrf.mxu0 }
 0x289   : > { %2682 = vmatpush.bf16.msrb.mxu2 %v4579_v28  ;;  %v2241_v28 = vand.u32 2147483648, %v4906_v43  ;;  %v3581_v9 = vpop.eup %3580  ;;  %v4986_v15 = vadd.f32 %v1964_v30, %v1932_v42  ;;  %v1376_v49 = vadd.f32 %v1212_v17, %v5586_v21 }
 0x28a   : > { %v2280_v48 = vmul.f32 %v3581_v9, %v4960_v56 }
 0x28b   : > { %v2242_v38 = vsel %vm2240_vm10, %v2241_v28, %v2239_v53  ;;  %3582 = vrsqrt.f32 %v4986_v15  ;;  %v5002_v7 = vadd.f32 %v4827_v55, %v1376_v49  ;;  %v1934_v53 = vmul.f32 %v4603_v8, %v4603_v8 }
 0x28c   : > { %2406 = vst [vmem:[%s4725_s15 + $0x98] sm:$0xff] %v2242_v38  ;;  %v2281_v61 = vmul.f32 %v3581_v9, %v2280_v48  ;;  %v1771_v6 = vpop.f32.mrf.mxu3  ;;  %vm2310_vm15 = vcmp.eq.f32.partialorder %v4986_v15, inf  ;;  %vm2312_vm1 = vcmp.eq.f32.partialorder %v4986_v15, 0.0 }
 0x28d   : > { %2683 = vmatpush.bf16.msrb.mxu2 %v4541_v13  ;;  %v2259_v13 = vsub.f32 1.5, %v2258_v1  ;;  %v1349_v28 = vpop.f32.mrf.mxu1  ;;  %v5012_v38 = vpack.c.bf16 %v5002_v7, %v4978_v46  ;;  %1865 = vst [vmem:[%s4364_s9 + $0xb0] sm:$0xff] %v5002_v7 }
 0x28e   : > { %v2282_v50 = vmul.f32 0.5, %v2281_v61  ;;  %v5589_v61 = vld [vmem:[#allocation39_spill] sm:$0xff] }
 0x28f   : > { %v2260_v43 = vmul.f32 %v3579_v41, %v2259_v13  ;;  %v1838_v41 = vadd.f32 %v1771_v6, %v1413_v5 }
 0x290   : > { %v1215_v13 = vpop.f32.mrf.mxu0 }
 0x291   : > { %2684 = vmatpush.bf16.msrb.mxu2 %v4503_v4  ;;  %v2261_v0 = vmul.f32 %v2260_v43, %v4930_v63  ;;  %v2265_v4 = vand.u32 2147483648, %v4930_v63  ;;  %1902 = vst [vmem:[%s4364_s9 + $0x1d8] sm:$0xff] %v1838_v41  ;;  %v1966_v22 = vmul.f32 %v1838_v41, %v1838_v41  ;;  %v5007_v42 = vpack.c.bf16 %v1838_v41, %v1836_v10  ;;  %v5587_v10 = vld [vmem:[#allocation22_spill] sm:$0xff] }
 0x292   : > { %v1415_v43 = vadd.f32 %v1349_v28, %v5587_v10  ;;  %v1378_v5 = vadd.f32 %v1215_v13, %v5588_v62  ;;  %v5591_v13 = vld [vmem:[#allocation23_spill] sm:$0xff] }
 0x293   : > { %v2263_v3 = vsel %vm2262_vm11, %v4930_v63, %v2261_v0  ;;  %v3583_v63 = vpop.eup %3582  ;;  %v5016_v55 = vadd.f32 %v1966_v22, %v1934_v53  ;;  %3257 = vmatmul.msk.bf16.gmra.mxu0 %vm447_vm0, %v5589_v61 }
 0x294   : > { %v2266_v1 = vsel %vm2264_vm12, %v2265_v4, %v2263_v3  ;;  %v2304_v8 = vmul.f32 %v3583_v63, %v4986_v15  ;;  %v1774_v0 = vpop.f32.mrf.mxu3  ;;  %v5032_v6 = vadd.f32 %v4896_v23, %v1378_v5  ;;  %v1936_v4 = vmul.f32 %v4628_v27, %v4628_v27  ;;  %v5590_v27 = vld [vmem:[#allocation24_spill] sm:$0xff] }
 0x295   : > { %2685 = vmatpush.bf16.msrb.mxu2 %v4465_v47  ;;  %2408 = vst [vmem:[%s4725_s15 + $0xa8] sm:$0xff] %v2266_v1  ;;  %v2283_v47 = vsub.f32 1.5, %v2282_v50  ;;  %3584 = vrsqrt.f32 %v5016_v55  ;;  %v5037_v50 = vpop.f32.mrf.mxu2  ;;  %v1351_v28 = vpop.f32.mrf.mxu1  ;;  %vm2334_vm2 = vcmp.eq.f32.partialorder %v5016_v55, inf  ;;  %vm2336_vm3 = vcmp.eq.f32.partialorder %v5016_v55, 0.0 }
 0x296   : > { %v2305_v17 = vmul.f32 %v3583_v63, %v2304_v8  ;;  %1867 = vst [vmem:[%s4364_s9 + $0xc0] sm:$0xff] %v5032_v6 }
 0x297   : > { %v2284_v30 = vmul.f32 %v3581_v9, %v2283_v47  ;;  %v1840_v9 = vadd.f32 %v1774_v0, %v1415_v43  ;;  %v1417_v47 = vadd.f32 %v1351_v28, %v5590_v27  ;;  %v1938_v0 = vmul.f32 %v4638_v16, %v4638_v16  ;;  %v5593_v27 = vld [vmem:[#allocation42_spill] sm:$0xff] }
 0x298   : > { %v2306_v49 = vmul.f32 0.5, %v2305_v17  ;;  %v1217_v22 = vpop.f32.mrf.mxu0 }
 0x299   : > { %2686 = vmatpush.bf16.msrb.mxu2 %v4427_v32  ;;  %v2285_v48 = vmul.f32 %v2284_v30, %v4960_v56  ;;  %v2289_v32 = vand.u32 2147483648, %v4960_v56  ;;  %1904 = vst [vmem:[%s4364_s9 + $0x1e8] sm:$0xff] %v1840_v9  ;;  %v1968_v3 = vmul.f32 %v1840_v9, %v1840_v9  ;;  %v1380_v10 = vadd.f32 %v1217_v22, %v5591_v13 }
 0x29a   : > { %v2337_v22 = vand.u32 2147483648, %v5016_v55 }
 0x29b   : > { %v2287_v21 = vsel %vm2286_vm13, %v4960_v56, %v2285_v48  ;;  %v3585_v53 = vpop.eup %3584  ;;  %v5042_v1 = vadd.f32 %v1968_v3, %v1936_v4  ;;  %v5054_v5 = vadd.f32 %v4933_v57, %v1380_v10 }
 0x29c   : > { %v2290_v41 = vsel %vm2288_vm14, %v2289_v32, %v2287_v21  ;;  %v2328_v23 = vmul.f32 %v3585_v53, %v5016_v55  ;;  %v1776_v43 = vpop.f32.mrf.mxu3 }
 0x29d   : > { %2687 = vmatpush.bf16.msrb.mxu2 %v4389_v31  ;;  %2410 = vst [vmem:[%s4725_s15 + $0xb8] sm:$0xff] %v2290_v41  ;;  %v2307_v31 = vsub.f32 1.5, %v2306_v49  ;;  %3586 = vrsqrt.f32 %v5042_v1  ;;  %v1842_v48 = vadd.f32 %v1776_v43, %v1417_v47  ;;  %v5064_v4 = vpack.c.bf16 %v5054_v5, %v5032_v6  ;;  %v5069_v57 = vpop.f32.mrf.mxu2 }
 0x29e   : > { %v2329_v8 = vmul.f32 %v3585_v53, %v2328_v23  ;;  %1869 = vst [vmem:[%s4364_s9 + $0xd0] sm:$0xff] %v5054_v5  ;;  %vm2360_vm4 = vcmp.eq.f32.partialorder %v5042_v1, 0.0 }
 0x29f   : > { %v2308_v56 = vmul.f32 %v3583_v63, %v2307_v31  ;;  %v2313_v63 = vand.u32 2147483648, %v4986_v15  ;;  %1906 = vst [vmem:[%s4364_s9 + $0x1f8] sm:$0xff] %v1842_v48  ;;  %v1970_v61 = vmul.f32 %v1842_v48, %v1842_v48  ;;  %v5059_v21 = vpack.c.bf16 %v1842_v48, %v1840_v9 }
 0x2a0   : > { %v2330_v62 = vmul.f32 0.5, %v2329_v8  ;;  %v1220_v9 = vpop.f32.mrf.mxu0 }
 0x2a1   : > { %v2309_v30 = vmul.f32 %v2308_v56, %v4986_v15  ;;  %2499 = vmatpush.bf16.msra.mxu3 %v5059_v21  ;;  %v5592_v56 = vld [vmem:[#allocation25_spill] sm:$0xff] }
 0x2a2   : > { %v2331_v49 = vsub.f32 1.5, %v2330_v62  ;;  %v1382_v23 = vadd.f32 %v1220_v9, %v5592_v56 }
 0x2a3   : > { %v2311_v17 = vsel %vm2310_vm15, %v4986_v15, %v2309_v30  ;;  %v3587_v41 = vpop.eup %3586  ;;  %v2002_v15 = vadd.f32 %v1970_v61, %v1938_v0  ;;  %3258 = vmatmul.msk.bf16.gmra.mxu0 %vm447_vm0, %v5593_v27  ;;  %vm2358_vm0 = vcmp.eq.f32.partialorder %v5042_v1, inf }
 0x2a4   : > { %v2314_v32 = vsel %vm2312_vm1, %v2313_v63, %v2311_v17  ;;  %v2332_v16 = vmul.f32 %v3585_v53, %v2331_v49  ;;  %v2352_v3 = vmul.f32 %v3587_v41, %v5042_v1  ;;  %v5082_v30 = vadd.f32 %v4966_v2, %v1382_v23  ;;  %v5594_v17 = vld [vmem:[#allocation26_spill] sm:$0xff] }
 0x2a5   : > { %2412 = vst [vmem:[%s4725_s15 + $0xc8] sm:$0xff] %v2314_v32  ;;  %3588 = vrsqrt.f32 %v2002_v15  ;;  %2500 = vmatpush.bf16.msra.mxu3 %v5007_v42  ;;  %v2361_v32 = vand.u32 2147483648, %v5042_v1  ;;  %vm2382_vm5 = vcmp.eq.f32.partialorder %v2002_v15, inf  ;;  %v2385_v23 = vand.u32 2147483648, %v2002_v15 }
 0x2a6   : > { %v2333_v31 = vmul.f32 %v2332_v16, %v5016_v55  ;;  %v2353_v28 = vmul.f32 %v3587_v41, %v2352_v3  ;;  %1871 = vst [vmem:[%s4364_s9 + $0xe0] sm:$0xff] %v5082_v30  ;;  %vm2384_vm6 = vcmp.eq.f32.partialorder %v2002_v15, 0.0 }
 0x2a8   : > { %v2335_v53 = vsel %vm2334_vm2, %v5016_v55, %v2333_v31  ;;  %v2354_v47 = vmul.f32 0.5, %v2353_v28  ;;  %v1222_v48 = vpop.f32.mrf.mxu0  ;;  %v1655_v55 = vpop.f32.mrf.mxu2  ;;  %v5595_v28 = vld [vmem:[#allocation27_spill] sm:$0xff] }
 0x2a9   : > { %v2338_v8 = vsel %vm2336_vm3, %v2337_v22, %v2335_v53  ;;  %2501 = vmatpush.bf16.msra.mxu3 %v4951_v35  ;;  %v1384_v62 = vadd.f32 %v1222_v48, %v5594_v17  ;;  %v1909_v48 = vmul.f32 %v4715_v52, %v4715_v52 }
 0x2aa   : > { %2414 = vst [vmem:[%s4725_s15 + $0xd8] sm:$0xff] %v2338_v8  ;;  %v2355_v13 = vsub.f32 1.5, %v2354_v47  ;;  %v1907_v47 = vmul.f32 %v4691_v51, %v4691_v51 }
 0x2ab   : > { %v3589_v10 = vpop.eup %3588  ;;  %v5093_v61 = vadd.f32 %v4997_v60, %v1384_v62 }
 0x2ac   : > { %v2356_v43 = vmul.f32 %v3587_v41, %v2355_v13  ;;  %v2376_v63 = vmul.f32 %v3589_v10, %v2002_v15 }
 0x2ad   : > { %2502 = vmatpush.bf16.msra.mxu3 %v4894_v44  ;;  %1873 = vst [vmem:[%s4364_s9 + $0xf0] sm:$0xff] %v5093_v61  ;;  %v5102_v3 = vpack.c.bf16 %v5093_v61, %v5082_v30 }
 0x2ae   : > { %v2357_v0 = vmul.f32 %v2356_v43, %v5042_v1  ;;  %v2377_v2 = vmul.f32 %v3589_v10, %v2376_v63  ;;  %v5596_v43 = vld [vmem:[#allocation28_spill] sm:$0xff] }
 0x2af   : > { %2460 = vmatpush.bf16.msra.mxu0 %v5102_v3 }
 0x2b0   : > { %v2359_v49 = vsel %vm2358_vm0, %v5042_v1, %v2357_v0  ;;  %v2378_v41 = vmul.f32 0.5, %v2377_v2  ;;  %v1225_v31 = vpop.f32.mrf.mxu0  ;;  %v1657_v27 = vpop.f32.mrf.mxu2 }
 0x2b1   : > { %v2362_v16 = vsel %vm2360_vm4, %v2361_v32, %v2359_v49  ;;  %2503 = vmatpush.bf16.msra.mxu3 %v4842_v26  ;;  %v1386_v1 = vadd.f32 %v1225_v31, %v5595_v28  ;;  %v5597_v49 = vld [vmem:[#allocation29_spill] sm:$0xff] }
 0x2b2   : > { %2416 = vst [vmem:[%s4725_s15 + $0xe8] sm:$0xff] %v2362_v16  ;;  %v2379_v9 = vsub.f32 1.5, %v2378_v41 }
 0x2b3   : > { %v1811_v22 = vadd.f32 %v5037_v50, %v1386_v1  ;;  %2461 = vmatpush.bf16.msra.mxu0 %v5064_v4 }
 0x2b4   : > { %v2380_v60 = vmul.f32 %v3589_v10, %v2379_v9 }
 0x2b5   : > { %2504 = vmatpush.bf16.msra.mxu3 %v4780_v14  ;;  %1875 = vst [vmem:[%s4364_s9 + $0x100] sm:$0xff] %v1811_v22  ;;  %v1939_v13 = vmul.f32 %v1811_v22, %v1811_v22 }
 0x2b6   : > { %v2381_v56 = vmul.f32 %v2380_v60, %v2002_v15  ;;  %v1911_v60 = vmul.f32 %v4750_v20, %v4750_v20 }
 0x2b7   : > { %v1971_v10 = vadd.f32 %v1939_v13, %v1907_v47  ;;  %2462 = vmatpush.bf16.msra.mxu0 %v5012_v38  ;;  %v5598_v47 = vld [vmem:[#allocation30_spill] sm:$0xff] }
 0x2b8   : > { %v2383_v53 = vsel %vm2382_vm5, %v2002_v15, %v2381_v56  ;;  %v1227_v50 = vpop.f32.mrf.mxu0  ;;  %v5122_v15 = vpop.f32.mrf.mxu2 }
 0x2b9   : > { %v2386_v8 = vsel %vm2384_vm6, %v2385_v23, %v2383_v53  ;;  %2505 = vmatpush.bf16.msra.mxu3 %v4723_v25  ;;  %3590 = vrsqrt.f32 %v1971_v10  ;;  %v1388_v63 = vadd.f32 %v1227_v50, %v5596_v43  ;;  %vm2010_vm7 = vcmp.eq.f32.partialorder %v1971_v10, inf }
 0x2ba   : > { %2418 = vst [vmem:[%s4725_s15 + $0xf8] sm:$0xff] %v2386_v8  ;;  %v2013_v13 = vand.u32 2147483648, %v1971_v10  ;;  %vm2012_vm8 = vcmp.eq.f32.partialorder %v1971_v10, 0.0 }
 0x2bb   : > { %2463 = vmatpush.bf16.msra.mxu0 %v4956_v45  ;;  %v1813_v51 = vadd.f32 %v5069_v57, %v1388_v63 }
 0x2bd   : > { %2506 = vmatpush.bf16.msra.mxu3 %v4676_v29  ;;  %1877 = vst [vmem:[%s4364_s9 + $0x110] sm:$0xff] %v1813_v51  ;;  %v1941_v17 = vmul.f32 %v1813_v51, %v1813_v51  ;;  %v5127_v62 = vpack.c.bf16 %v1813_v51, %v1811_v22 }
 0x2bf   : > { %v3591_v0 = vpop.eup %3590  ;;  %2464 = vmatpush.bf16.msra.mxu0 %v4902_v59  ;;  %v5131_v32 = vadd.f32 %v1941_v17, %v1909_v48  ;;  %v1913_v17 = vmul.f32 %v4772_v39, %v4772_v39 }
 0x2c0   : > { %2507 = vmatmul.bf16.vlgmr.msra.gmra.mxu3 %v4775_v12  ;;  %v2004_v2 = vmul.f32 %v3591_v0, %v1971_v10  ;;  %v1230_v57 = vpop.f32.mrf.mxu0  ;;  %v5144_v56 = vpop.f32.mrf.mxu2 }
 0x2c1   : > { %2564 = vmatpush.bf16.msrb.mxu3 %v5059_v21  ;;  %v1390_v41 = vadd.f32 %v1230_v57, %v5597_v49  ;;  %3592 = vrsqrt.f32 %v5131_v32  ;;  %vm2034_vm9 = vcmp.eq.f32.partialorder %v5131_v32, inf  ;;  %vm2036_vm10 = vcmp.eq.f32.partialorder %v5131_v32, 0.0 }
 0x2c2   : > { %v2005_v16 = vmul.f32 %v3591_v0, %v2004_v2 }
 0x2c3   : > { %v1815_v52 = vadd.f32 %v1655_v55, %v1390_v41  ;;  %2465 = vmatpush.bf16.msra.mxu0 %v4848_v37 }
 0x2c4   : > { %v2006_v9 = vmul.f32 0.5, %v2005_v16  ;;  %v5599_v16 = vld [vmem:[#allocation31_spill] sm:$0xff] }
 0x2c5   : > { %2565 = vmatpush.bf16.msrb.mxu3 %v5007_v42  ;;  %1879 = vst [vmem:[%s4364_s9 + $0x120] sm:$0xff] %v1815_v52  ;;  %v1943_v31 = vmul.f32 %v1815_v52, %v1815_v52 }
 0x2c6   : > { %v2007_v28 = vsub.f32 1.5, %v2006_v9 }
 0x2c7   : > { %v5141_v1 = vadd.f32 %v1943_v31, %v1911_v60  ;;  %2466 = vmatpush.bf16.msra.mxu0 %v4785_v36  ;;  %v3593_v23 = vpop.eup %3592 }
 0x2c8   : > { %v2008_v22 = vmul.f32 %v3591_v0, %v2007_v28  ;;  %v1232_v55 = vpop.f32.mrf.mxu0  ;;  %v2028_v53 = vmul.f32 %v3593_v23, %v5131_v32  ;;  %v2037_v28 = vand.u32 2147483648, %v5131_v32 }
 0x2c9   : > { %2566 = vmatpush.bf16.msrb.mxu3 %v4951_v35  ;;  %3594 = vrsqrt.f32 %v5141_v1  ;;  %v1392_v8 = vadd.f32 %v1232_v55, %v5598_v47  ;;  %vm2058_vm11 = vcmp.eq.f32.partialorder %v5141_v1, inf  ;;  %vm2060_vm12 = vcmp.eq.f32.partialorder %v5141_v1, 0.0 }
 0x2ca   : > { %v2009_v20 = vmul.f32 %v2008_v22, %v1971_v10  ;;  %v2029_v50 = vmul.f32 %v3593_v23, %v2028_v53 }
 0x2cb   : > { %2467 = vmatpush.bf16.msra.mxu0 %v4731_v34  ;;  %v1817_v63 = vadd.f32 %v1657_v27, %v1392_v8 }
 0x2cc   : > { %v2011_v43 = vsel %vm2010_vm7, %v1971_v10, %v2009_v20  ;;  %v2030_v48 = vmul.f32 0.5, %v2029_v50 }
 0x2cd   : > { %2567 = vmatpush.bf16.msrb.mxu3 %v4894_v44  ;;  %v2014_v51 = vsel %vm2012_vm8, %v2013_v13, %v2011_v43  ;;  %v1945_v0 = vmul.f32 %v1817_v63, %v1817_v63  ;;  %v5156_v2 = vpack.c.bf16 %v1817_v63, %v1815_v52  ;;  %1881 = vst [vmem:[%s4364_s9 + $0x130] sm:$0xff] %v1817_v63  ;;  %v1665_v52 = vpop.f32.mrf.mxu2  ;;  %v5183_v43 = vld.sshfl [vmem:[#allocation1 + $0x8] sm:$0xff pattern:$0x73625140]  ;;  %v5600_v63 = vld [vmem:[#allocation32_spill] sm:$0xff] }
 0x2ce   : > { %2387 = vst [vmem:[%s4725_s15] sm:$0xff] %v2014_v51  ;;  %2468 = vmatmul.bf16.vlgmr.msra.gmra.mxu0 %v4710_v40  ;;  %v2031_v49 = vsub.f32 1.5, %v2030_v48  ;;  %v2061_v48 = vand.u32 2147483648, %v5141_v1 }
 0x2cf   : > { %2525 = vmatpush.bf16.msrb.mxu0 %v5102_v3  ;;  %v3595_v57 = vpop.eup %3594  ;;  %v5161_v10 = vadd.f32 %v1945_v0, %v1913_v17 }
 0x2d0   : > { %v2052_v27 = vmul.f32 %v3595_v57, %v5141_v1  ;;  %v1235_v41 = vpop.f32.mrf.mxu0  ;;  %v2032_v39 = vmul.f32 %v3593_v23, %v2031_v49  ;;  %v1915_v23 = vmul.f32 %v4809_v54, %v4809_v54 }
 0x2d1   : > { %2568 = vmatpush.bf16.msrb.mxu3 %v4842_v26  ;;  %v1394_v9 = vadd.f32 %v1235_v41, %v5599_v16  ;;  %3596 = vrsqrt.f32 %v5161_v10  ;;  %vm2082_vm13 = vcmp.eq.f32.partialorder %v5161_v10, inf  ;;  %vm2084_vm14 = vcmp.eq.f32.partialorder %v5161_v10, 0.0 }
 0x2d2   : > { %v2053_v60 = vmul.f32 %v3595_v57, %v2052_v27  ;;  %v2033_v40 = vmul.f32 %v2032_v39, %v5131_v32  ;;  %v1917_v39 = vmul.f32 %v4837_v33, %v4837_v33 }
 0x2d3   : > { %2526 = vmatpush.bf16.msrb.mxu0 %v5064_v4  ;;  %v1819_v31 = vadd.f32 %v5122_v15, %v1394_v9 }
 0x2d4   : > { %v2054_v22 = vmul.f32 0.5, %v2053_v60  ;;  %v2035_v55 = vsel %vm2034_vm9, %v5131_v32, %v2033_v40 }
 0x2d5   : > { %2569 = vmatpush.bf16.msrb.mxu3 %v4780_v14  ;;  %1883 = vst [vmem:[%s4364_s9 + $0x140] sm:$0xff] %v1819_v31  ;;  %v1947_v53 = vmul.f32 %v1819_v31, %v1819_v31  ;;  %v2038_v20 = vsel %vm2036_vm10, %v2037_v28, %v2035_v55  ;;  %v1667_v0 = vpop.f32.mrf.mxu2 }
 0x2d6   : > { %v2055_v15 = vsub.f32 1.5, %v2054_v22  ;;  %2389 = vst [vmem:[%s4725_s15 + $0x10] sm:$0xff] %v2038_v20  ;;  %v2085_v20 = vand.u32 2147483648, %v5161_v10 }
 0x2d7   : > { %2527 = vmatpush.bf16.msrb.mxu0 %v5012_v38  ;;  %v5179_v47 = vadd.f32 %v1947_v53, %v1915_v23  ;;  %v3597_v8 = vpop.eup %3596  ;;  %v5601_v23 = vld [vmem:[#allocation34_spill] sm:$0xff] }
 0x2d8   : > { %v2056_v13 = vmul.f32 %v3595_v57, %v2055_v15  ;;  %v1237_v50 = vpop.f32.mrf.mxu0  ;;  %v2076_v54 = vmul.f32 %v3597_v8, %v5161_v10 }
 0x2d9   : > { %2570 = vmatpush.bf16.msrb.mxu3 %v4723_v25  ;;  %3598 = vrsqrt.f32 %v5179_v47  ;;  %v1396_v51 = vadd.f32 %v1237_v50, %v5600_v63  ;;  %vm2106_vm15 = vcmp.eq.f32.partialorder %v5179_v47, inf  ;;  %vm2108_vm1 = vcmp.eq.f32.partialorder %v5179_v47, 0.0 }
 0x2da   : > { %v2057_v32 = vmul.f32 %v2056_v13, %v5141_v1  ;;  %v2077_v17 = vmul.f32 %v3597_v8, %v2076_v54 }
 0x2db   : > { %2528 = vmatpush.bf16.msrb.mxu0 %v4956_v45  ;;  %v1821_v49 = vadd.f32 %v5144_v56, %v1396_v51 }
 0x2dc   : > { %v2059_v57 = vsel %vm2058_vm11, %v5141_v1, %v2057_v32  ;;  %v2078_v41 = vmul.f32 0.5, %v2077_v17 }
 0x2dd   : > { %2571 = vmatpush.bf16.msrb.mxu3 %v4676_v29  ;;  %v2062_v27 = vsel %vm2060_vm12, %v2061_v48, %v2059_v57  ;;  %v1949_v16 = vmul.f32 %v1821_v49, %v1821_v49  ;;  %v5201_v9 = vpack.c.bf16 %v1821_v49, %v1819_v31  ;;  %1885 = vst [vmem:[%s4364_s9 + $0x150] sm:$0xff] %v1821_v49  ;;  %v1670_v54 = vpop.f32.mrf.mxu2  ;;  %v5602_v57 = vld [vmem:[#allocation35_spill] sm:$0xff] }
 0x2de   : > { %2391 = vst [vmem:[%s4725_s15 + $0x20] sm:$0xff] %v2062_v27  ;;  %v2079_v40 = vsub.f32 1.5, %v2078_v41  ;;  %v2109_v27 = vand.u32 2147483648, %v5179_v47 }
 0x2df   : > { %2529 = vmatpush.bf16.msrb.mxu0 %v4902_v59  ;;  %v3599_v60 = vpop.eup %3598  ;;  %v5205_v28 = vadd.f32 %v1949_v16, %v1917_v39 }
 0x2e0   : > { %2572 = vmatmul.bf16.vlgmr.msrb.gmra.mxu3 %v5183_v43  ;;  %v2100_v1 = vmul.f32 %v3599_v60, %v5179_v47  ;;  %v1240_v56 = vpop.f32.mrf.mxu0  ;;  %v2080_v22 = vmul.f32 %v3597_v8, %v2079_v40  ;;  %v1919_v8 = vmul.f32 %v4867_v11, %v4867_v11 }
 0x2e1   : > { %2624 = vmatpush.bf16.msra.mxu3 %v5059_v21  ;;  %v1398_v55 = vadd.f32 %v1240_v56, %v5601_v23  ;;  %3600 = vrsqrt.f32 %v5205_v28  ;;  %vm2130_vm2 = vcmp.eq.f32.partialorder %v5205_v28, inf  ;;  %vm2132_vm3 = vcmp.eq.f32.partialorder %v5205_v28, 0.0 }
 0x2e2   : > { %v2101_v33 = vmul.f32 %v3599_v60, %v2100_v1  ;;  %v2081_v31 = vmul.f32 %v2080_v22, %v5161_v10  ;;  %v1921_v1 = vmul.f32 %v4889_v18, %v4889_v18 }
 0x2e3   : > { %2530 = vmatpush.bf16.msrb.mxu0 %v4848_v37  ;;  %v1823_v53 = vadd.f32 %v1665_v52, %v1398_v55 }
 0x2e4   : > { %v2102_v15 = vmul.f32 0.5, %v2101_v33  ;;  %v2083_v13 = vsel %vm2082_vm13, %v5161_v10, %v2081_v31 }
 0x2e5   : > { %2625 = vmatpush.bf16.msra.mxu3 %v5007_v42  ;;  %1887 = vst [vmem:[%s4364_s9 + $0x160] sm:$0xff] %v1823_v53  ;;  %v1951_v50 = vmul.f32 %v1823_v53, %v1823_v53  ;;  %v2086_v52 = vsel %vm2084_vm14, %v2085_v20, %v2083_v13  ;;  %v1672_v55 = vpop.f32.mrf.mxu2  ;;  %v5603_v20 = vld [vmem:[#allocation37_spill] sm:$0xff]  ;;  %v1923_v13 = vmul.f32 %v4921_v24, %v4921_v24 }
 0x2e6   : > { %v2103_v32 = vsub.f32 1.5, %v2102_v15  ;;  %2393 = vst [vmem:[%s4725_s15 + $0x30] sm:$0xff] %v2086_v52 }
 0x2e7   : > { %2531 = vmatpush.bf16.msrb.mxu0 %v4785_v36  ;;  %v5222_v63 = vadd.f32 %v1951_v50, %v1919_v8  ;;  %v3601_v51 = vpop.eup %3600  ;;  %v2133_v50 = vand.u32 2147483648, %v5205_v28 }
 0x2e8   : > { %v2104_v48 = vmul.f32 %v3599_v60, %v2103_v32  ;;  %v1242_v17 = vpop.f32.mrf.mxu0  ;;  %v2124_v11 = vmul.f32 %v3601_v51, %v5205_v28 }
 0x2e9   : > { %2626 = vmatpush.bf16.msra.mxu3 %v4951_v35  ;;  %3602 = vrsqrt.f32 %v5222_v63  ;;  %v1400_v49 = vadd.f32 %v1242_v17, %v5602_v57  ;;  %vm2154_vm0 = vcmp.eq.f32.partialorder %v5222_v63, inf  ;;  %vm2156_vm4 = vcmp.eq.f32.partialorder %v5222_v63, 0.0 }
 0x2ea   : > { %v2105_v10 = vmul.f32 %v2104_v48, %v5179_v47  ;;  %v2125_v41 = vmul.f32 %v3601_v51, %v2124_v11 }
 0x2eb   : > { %2532 = vmatpush.bf16.msrb.mxu0 %v4731_v34  ;;  %v1825_v16 = vadd.f32 %v1667_v0, %v1400_v49 }
 0x2ec   : > { %v2107_v39 = vsel %vm2106_vm15, %v5179_v47, %v2105_v10  ;;  %v2126_v40 = vmul.f32 0.5, %v2125_v41 }
 0x2ed   : > { %2627 = vmatpush.bf16.msra.mxu3 %v4894_v44  ;;  %v2110_v60 = vsel %vm2108_vm1, %v2109_v27, %v2107_v39  ;;  %v1953_v56 = vmul.f32 %v1825_v16, %v1825_v16  ;;  %v5241_v22 = vpack.c.bf16 %v1825_v16, %v1823_v53  ;;  %1889 = vst [vmem:[%s4364_s9 + $0x170] sm:$0xff] %v1825_v16  ;;  %v5604_v27 = vld [vmem:[#allocation38_spill] sm:$0xff] }
 0x2ee   : > { %2533 = vmatmul.bf16.vlgmr.msrb.gmra.mxu0 %v4822_v19  ;;  %2395 = vst [vmem:[%s4725_s15 + $0x40] sm:$0xff] %v2110_v60  ;;  %v2127_v19 = vsub.f32 1.5, %v2126_v40 }
 0x2ef   : > { %2585 = vmatpush.bf16.msra.mxu0 %v5102_v3  ;;  %v3603_v23 = vpop.eup %3602  ;;  %v5245_v0 = vadd.f32 %v1953_v56, %v1921_v1  ;;  %v1925_v56 = vmul.f32 %v4946_v58, %v4946_v58 }
 0x2f0   : > { %v2148_v47 = vmul.f32 %v3603_v23, %v5222_v63  ;;  %v1245_v33 = vpop.f32.mrf.mxu0  ;;  %v2128_v31 = vmul.f32 %v3601_v51, %v2127_v19 }
 0x2f1   : > { %2628 = vmatpush.bf16.msra.mxu3 %v4842_v26  ;;  %v1402_v15 = vadd.f32 %v1245_v33, %v5603_v20  ;;  %3604 = vrsqrt.f32 %v5245_v0  ;;  %v5605_v20 = vld [vmem:[#allocation40_spill] sm:$0xff]  ;;  %vm2178_vm5 = vcmp.eq.f32.partialorder %v5245_v0, inf  ;;  %vm2180_vm6 = vcmp.eq.f32.partialorder %v5245_v0, 0.0 }
 0x2f2   : > { %v2149_v18 = vmul.f32 %v3603_v23, %v2148_v47  ;;  %v2129_v53 = vmul.f32 %v2128_v31, %v5205_v28 }
 0x2f3   : > { %2586 = vmatpush.bf16.msra.mxu0 %v5064_v4  ;;  %v1827_v8 = vadd.f32 %v1670_v54, %v1402_v15 }
 0x2f4   : > { %v2150_v52 = vmul.f32 0.5, %v2149_v18  ;;  %v2131_v32 = vsel %vm2130_vm2, %v5205_v28, %v2129_v53  ;;  %v1675_v28 = vpop.f32.mrf.mxu2 }
 0x2f5   : > { %2629 = vmatpush.bf16.msra.mxu3 %v4780_v14  ;;  %1891 = vst [vmem:[%s4364_s9 + $0x180] sm:$0xff] %v1827_v8  ;;  %v1955_v51 = vmul.f32 %v1827_v8, %v1827_v8  ;;  %v2134_v48 = vsel %vm2132_vm3, %v2133_v50, %v2131_v32  ;;  %v1927_v50 = vmul.f32 %v4978_v46, %v4978_v46 }
 0x2f6   : > { %v2151_v54 = vsub.f32 1.5, %v2150_v52  ;;  %2397 = vst [vmem:[%s4725_s15 + $0x50] sm:$0xff] %v2134_v48 }
 0x2f7   : > { %2587 = vmatpush.bf16.msra.mxu0 %v5012_v38  ;;  %v5263_v24 = vadd.f32 %v1955_v51, %v1923_v13  ;;  %v3605_v17 = vpop.eup %3604 }
 0x2f8   : > { %v2152_v11 = vmul.f32 %v3603_v23, %v2151_v54  ;;  %v1247_v10 = vpop.f32.mrf.mxu0  ;;  %v2172_v57 = vmul.f32 %v3605_v17, %v5245_v0 }
 0x2f9   : > { %2630 = vmatpush.bf16.msra.mxu3 %v4723_v25  ;;  %3606 = vrsqrt.f32 %v5263_v24  ;;  %v1404_v41 = vadd.f32 %v1247_v10, %v5604_v27  ;;  %v5606_v10 = vld [vmem:[#allocation41_spill] sm:$0xff]  ;;  %vm2202_vm7 = vcmp.eq.f32.partialorder %v5263_v24, inf  ;;  %vm2204_vm8 = vcmp.eq.f32.partialorder %v5263_v24, 0.0 }
 0x2fa   : > { %v2153_v49 = vmul.f32 %v2152_v11, %v5222_v63  ;;  %v2173_v39 = vmul.f32 %v3605_v17, %v2172_v57 }
 0x2fb   : > { %2588 = vmatpush.bf16.msra.mxu0 %v4956_v45  ;;  %v1829_v60 = vadd.f32 %v1672_v55, %v1404_v41 }
 0x2fc   : > { %v2155_v16 = vsel %vm2154_vm0, %v5222_v63, %v2153_v49  ;;  %v2174_v1 = vmul.f32 0.5, %v2173_v39  ;;  %v1677_v53 = vpop.f32.mrf.mxu2  ;;  %v1929_v39 = vmul.f32 %v5002_v7, %v5002_v7 }
 0x2fd   : > { %2631 = vmatpush.bf16.msra.mxu3 %v4676_v29  ;;  %v5279_v23 = vpack.c.bf16 %v1829_v60, %v1827_v8  ;;  %1893 = vst [vmem:[%s4364_s9 + $0x190] sm:$0xff] %v1829_v60  ;;  %v2181_v8 = vand.u32 2147483648, %v5245_v0 }
 0x2fe   : > { %v2175_v47 = vsub.f32 1.5, %v2174_v1 }
 0x2ff   : > { %2589 = vmatpush.bf16.msra.mxu0 %v4902_v59  ;;  %v3607_v19 = vpop.eup %3606 }
 0x300   : > { %v2196_v33 = vmul.f32 %v3607_v19, %v5263_v24  ;;  %v1250_v55 = vpop.f32.mrf.mxu0  ;;  %v2176_v31 = vmul.f32 %v3605_v17, %v2175_v47 }
 0x301   : > { %2693 = vmatpush.bf16.msrb.mxu3 %v5059_v21  ;;  %v2157_v21 = vand.u32 2147483648, %v5222_v63  ;;  %v1406_v15 = vadd.f32 %v1250_v55, %v5605_v20  ;;  %v1931_v55 = vmul.f32 %v5032_v6, %v5032_v6 }
 0x302   : > { %v2197_v58 = vmul.f32 %v3607_v19, %v2196_v33 }
 0x303   : > { %v2158_v40 = vsel %vm2156_vm4, %v2157_v21, %v2155_v16  ;;  %2590 = vmatpush.bf16.msra.mxu0 %v4848_v37  ;;  %v1831_v18 = vadd.f32 %v1675_v28, %v1406_v15 }
 0x304   : > { %2399 = vst [vmem:[%s4725_s15 + $0x60] sm:$0xff] %v2158_v40  ;;  %v2198_v13 = vmul.f32 0.5, %v2197_v58  ;;  %v1680_v21 = vpop.f32.mrf.mxu2 }
 0x305   : > { %2694 = vmatpush.bf16.msrb.mxu3 %v5007_v42  ;;  %v1957_v42 = vmul.f32 %v1829_v60, %v1829_v60  ;;  %1895 = vst [vmem:[%s4364_s9 + $0x1a0] sm:$0xff] %v1831_v18  ;;  %v1959_v32 = vmul.f32 %v1831_v18, %v1831_v18 }
 0x306   : > { %v2199_v51 = vsub.f32 1.5, %v2198_v13 }
 0x307   : > { %v5284_v63 = vadd.f32 %v1957_v42, %v1925_v56  ;;  %2591 = vmatpush.bf16.msra.mxu0 %v4785_v36  ;;  %v5302_v48 = vadd.f32 %v1959_v32, %v1927_v50  ;;  %v5607_v42 = vld [vmem:[#allocation43_spill] sm:$0xff] }
 0x308   : > { %v2200_v17 = vmul.f32 %v3607_v19, %v2199_v51  ;;  %v1252_v46 = vpop.f32.mrf.mxu0 }
 0x309   : > { %2695 = vmatpush.bf16.msrb.mxu3 %v4951_v35  ;;  %3608 = vrsqrt.f32 %v5284_v63  ;;  %v2177_v35 = vmul.f32 %v2176_v31, %v5245_v0  ;;  %v1408_v57 = vadd.f32 %v1252_v46, %v5606_v10  ;;  %vm2226_vm9 = vcmp.eq.f32.partialorder %v5284_v63, inf }
 0x30a   : > { %3610 = vrsqrt.f32 %v5302_v48  ;;  %v2229_v47 = vand.u32 2147483648, %v5284_v63  ;;  %vm2228_vm10 = vcmp.eq.f32.partialorder %v5284_v63, 0.0  ;;  %vm2250_vm11 = vcmp.eq.f32.partialorder %v5302_v48, inf }
 0x30b   : > { %v2179_v52 = vsel %vm2178_vm5, %v5245_v0, %v2177_v35  ;;  %2592 = vmatpush.bf16.msra.mxu0 %v4731_v34  ;;  %v2201_v0 = vmul.f32 %v2200_v17, %v5263_v24  ;;  %v1833_v49 = vadd.f32 %v1677_v53, %v1408_v57  ;;  %vm2252_vm12 = vcmp.eq.f32.partialorder %v5302_v48, 0.0 }
 0x30c   : > { %v1682_v58 = vpop.f32.mrf.mxu2 }
 0x30d   : > { %2696 = vmatpush.bf16.msrb.mxu3 %v4894_v44  ;;  %v2182_v44 = vsel %vm2180_vm6, %v2181_v8, %v2179_v52  ;;  %v2203_v28 = vsel %vm2202_vm7, %v5263_v24, %v2201_v0  ;;  %1897 = vst [vmem:[%s4364_s9 + $0x1b0] sm:$0xff] %v1833_v49  ;;  %v5608_v8 = vld [vmem:[#allocation44_spill] sm:$0xff] }
 0x30e   : > { %2401 = vst [vmem:[%s4725_s15 + $0x70] sm:$0xff] %v2182_v44 }
 0x30f   : > { %2654 = vmatpush.bf16.msrb.mxu0 %v5102_v3  ;;  %v3609_v54 = vpop.eup %3608 }
 0x310   : > { %v2220_v11 = vmul.f32 %v3609_v54, %v5284_v63  ;;  %v3611_v16 = vpop.eup %3610  ;;  %v1255_v1 = vpop.f32.mrf.mxu0 }
 0x311   : > { %2697 = vmatpush.bf16.msrb.mxu3 %v4842_v26  ;;  %v2205_v26 = vand.u32 2147483648, %v5263_v24  ;;  %v2244_v24 = vmul.f32 %v3611_v16, %v5302_v48  ;;  %v1410_v7 = vadd.f32 %v1255_v1, %v5607_v42  ;;  %v5610_v1 = vld [vmem:[#allocation46_spill] sm:$0xff] }
 0x312   : > { %v2221_v3 = vmul.f32 %v3609_v54, %v2220_v11 }
 0x313   : > { %2655 = vmatpush.bf16.msrb.mxu0 %v5064_v4  ;;  %v2206_v27 = vsel %vm2204_vm8, %v2205_v26, %v2203_v28  ;;  %v1961_v4 = vmul.f32 %v1833_v49, %v1833_v49  ;;  %v2245_v19 = vmul.f32 %v3611_v16, %v2244_v24 }
 0x314   : > { %v2222_v41 = vmul.f32 0.5, %v2221_v3  ;;  %2403 = vst [vmem:[%s4725_s15 + $0x80] sm:$0xff] %v2206_v27  ;;  %v1685_v26 = vpop.f32.mrf.mxu2  ;;  %v5609_v3 = vld [vmem:[#allocation45_spill] sm:$0xff] }
 0x315   : > { %2698 = vmatpush.bf16.msrb.mxu3 %v4780_v14  ;;  %v5317_v14 = vpack.c.bf16 %v1833_v49, %v1831_v18  ;;  %v5323_v40 = vadd.f32 %v1961_v4, %v1929_v39  ;;  %v2246_v33 = vmul.f32 0.5, %v2245_v19 }
 0x316   : > { %v2223_v60 = vsub.f32 1.5, %v2222_v41 }
 0x317   : > { %2656 = vmatpush.bf16.msrb.mxu0 %v5012_v38  ;;  %3612 = vrsqrt.f32 %v5323_v40  ;;  %v1835_v38 = vadd.f32 %v1680_v21, %v1410_v7  ;;  %v2247_v15 = vsub.f32 1.5, %v2246_v33  ;;  %vm2274_vm13 = vcmp.eq.f32.partialorder %v5323_v40, inf }
 0x318   : > { %v2224_v56 = vmul.f32 %v3609_v54, %v2223_v60  ;;  %v1257_v53 = vpop.f32.mrf.mxu0  ;;  %v1933_v54 = vmul.f32 %v5054_v5, %v5054_v5  ;;  %v2277_v27 = vand.u32 2147483648, %v5323_v40  ;;  %v1935_v21 = vmul.f32 %v5082_v30, %v5082_v30 }
 0x319   : > { %2699 = vmatpush.bf16.msrb.mxu3 %v4723_v25  ;;  %1899 = vst [vmem:[%s4364_s9 + $0x1c0] sm:$0xff] %v1835_v38  ;;  %v1963_v20 = vmul.f32 %v1835_v38, %v1835_v38  ;;  %v2248_v18 = vmul.f32 %v3611_v16, %v2247_v15  ;;  %v1412_v13 = vadd.f32 %v1257_v53, %v5608_v8  ;;  %vm2276_vm14 = vcmp.eq.f32.partialorder %v5323_v40, 0.0 }
 0x31a   : > { %v2225_v25 = vmul.f32 %v2224_v56, %v5284_v63  ;;  %v5611_v56 = vld [vmem:[#allocation36_spill] sm:$0xff]  ;;  %v1937_v15 = vmul.f32 %v5093_v61, %v5093_v61 }
 0x31b   : > { %2657 = vmatpush.bf16.msrb.mxu0 %v4956_v45  ;;  %v1837_v32 = vadd.f32 %v1682_v58, %v1412_v13  ;;  %v902_v42 = vadd.f32 %v5611_v56, %v5610_v1 }
 0x31c   : > { %v2227_v31 = vsel %vm2226_vm9, %v5284_v63, %v2225_v25  ;;  %v2249_v63 = vmul.f32 %v2248_v18, %v5302_v48  ;;  %v1687_v33 = vpop.f32.mrf.mxu2 }
 0x31d   : > { %2700 = vmatpush.bf16.msrb.mxu3 %v4676_v29  ;;  %v2230_v45 = vsel %vm2228_vm10, %v2229_v47, %v2227_v31  ;;  %v5339_v29 = vadd.f32 %v1963_v20, %v1931_v55  ;;  %v3613_v35 = vpop.eup %3612  ;;  %v1965_v17 = vmul.f32 %v1837_v32, %v1837_v32  ;;  %v5353_v46 = vpack.c.bf16 %v1837_v32, %v1835_v38 }
 0x31e   : > { %2405 = vst [vmem:[%s4725_s15 + $0x90] sm:$0xff] %v2230_v45  ;;  %v2268_v6 = vmul.f32 %v3613_v35, %v5323_v40  ;;  %v2251_v52 = vsel %vm2250_vm11, %v5302_v48, %v2249_v63 }
 0x31f   : > { %2658 = vmatpush.bf16.msrb.mxu0 %v4902_v59  ;;  %3614 = vrsqrt.f32 %v5339_v29  ;;  %v2253_v59 = vand.u32 2147483648, %v5302_v48  ;;  %1901 = vst [vmem:[%s4364_s9 + $0x1d0] sm:$0xff] %v1837_v32  ;;  %v1997_v10 = vadd.f32 %v1965_v17, %v1933_v54  ;;  %vm2298_vm15 = vcmp.eq.f32.partialorder %v5339_v29, inf }
 0x320   : > { %v2269_v50 = vmul.f32 %v3613_v35, %v2268_v6  ;;  %v1260_v48 = vpop.f32.mrf.mxu0  ;;  %vm2300_vm1 = vcmp.eq.f32.partialorder %v5339_v29, 0.0 }
 0x321   : > { %v2254_v44 = vsel %vm2252_vm12, %v2253_v59, %v2251_v52  ;;  %v1414_v28 = vadd.f32 %v1260_v48, %v5609_v3  ;;  %3616 = vrsqrt.f32 %v1997_v10  ;;  %vm2322_vm2 = vcmp.eq.f32.partialorder %v1997_v10, inf }
 0x322   : > { %v2270_v51 = vmul.f32 0.5, %v2269_v50  ;;  %2407 = vst [vmem:[%s4725_s15 + $0xa0] sm:$0xff] %v2254_v44  ;;  %v2325_v59 = vand.u32 2147483648, %v1997_v10  ;;  %vm2324_vm3 = vcmp.eq.f32.partialorder %v1997_v10, 0.0 }
 0x323   : > { %2659 = vmatpush.bf16.msrb.mxu0 %v4848_v37 }
 0x324   : > { %v2271_v11 = vsub.f32 1.5, %v2270_v51 }
 0x325   : > { %v3615_v37 = vpop.eup %3614 }
 0x326   : > { %v2292_v0 = vmul.f32 %v3615_v37, %v5339_v29  ;;  %v2272_v57 = vmul.f32 %v3613_v35, %v2271_v11 }
 0x327   : > { %2660 = vmatpush.bf16.msrb.mxu0 %v4785_v36  ;;  %v1839_v36 = vadd.f32 %v1685_v26, %v1414_v28  ;;  %v3617_v24 = vpop.eup %3616  ;;  %v3404_v28 = vld [vmem:[%s5537_s2 + $0x8] sm:$0xf] }
 0x328   : > { %v2293_v5 = vmul.f32 %v3615_v37, %v2292_v0  ;;  %v2273_v49 = vmul.f32 %v2272_v57, %v5323_v40  ;;  %v1262_v19 = vpop.f32.mrf.mxu0  ;;  %v2316_v25 = vmul.f32 %v3617_v24, %v1997_v10  ;;  %2580 = vst [vmem:[#allocation1] ss:$4 sm:$0xff] %v3404_v28 }
 0x329   : > { %1903 = vst [vmem:[%s4364_s9 + $0x1e0] sm:$0xff] %v1839_v36  ;;  %v1967_v4 = vmul.f32 %v1839_v36, %v1839_v36  ;;  %v1416_v38 = vadd.f32 %v1262_v19, %v902_v42 }
 0x32a   : > { %v2294_v41 = vmul.f32 0.5, %v2293_v5  ;;  %v2275_v39 = vsel %vm2274_vm13, %v5323_v40, %v2273_v49  ;;  %v2301_v40 = vand.u32 2147483648, %v5339_v29  ;;  %v2317_v47 = vmul.f32 %v3617_v24, %v2316_v25 }
 0x32b   : > { %2661 = vmatpush.bf16.msrb.mxu0 %v4731_v34  ;;  %v2278_v16 = vsel %vm2276_vm14, %v2277_v27, %v2275_v39  ;;  %v1999_v34 = vadd.f32 %v1967_v4, %v1935_v21  ;;  %v1841_v31 = vadd.f32 %v1687_v33, %v1416_v38 }
 0x32c   : > { %v2295_v60 = vsub.f32 1.5, %v2294_v41  ;;  %2409 = vst [vmem:[%s4725_s15 + $0xb0] sm:$0xff] %v2278_v16  ;;  %v2318_v45 = vmul.f32 0.5, %v2317_v47  ;;  %v2495_v16 = vpop.f32.mrf.mxu2 }
 0x32d   : > { %3618 = vrsqrt.f32 %v1999_v34  ;;  %v1969_v58 = vmul.f32 %v1841_v31, %v1841_v31  ;;  %v5379_v35 = vpack.c.bf16 %v1841_v31, %v1839_v36  ;;  %1905 = vst [vmem:[%s4364_s9 + $0x1f0] sm:$0xff] %v1841_v31  ;;  %vm2346_vm0 = vcmp.eq.f32.partialorder %v1999_v34, inf }
 0x32e   : > { %v2296_v7 = vmul.f32 %v3615_v37, %v2295_v60  ;;  %v2319_v53 = vsub.f32 1.5, %v2318_v45  ;;  %v2349_v37 = vand.u32 2147483648, %v1999_v34  ;;  %vm2348_vm4 = vcmp.eq.f32.partialorder %v1999_v34, 0.0 }
 0x32f   : > { %v2001_v63 = vadd.f32 %v1969_v58, %v1937_v15  ;;  %2473 = vmatpush.bf16.msra.mxu1 %v5379_v35  ;;  %v2581_v27 = vld.sshfl [vmem:[#allocation1] sm:$0xff pattern:$0x73625140]  ;;  %v2582_v41 = vld.sshfl [vmem:[#allocation1 + $0x8] sm:$0xff pattern:$0x73625140] }
 0x330   : > { %v2297_v30 = vmul.f32 %v2296_v7, %v5339_v29  ;;  %v2320_v8 = vmul.f32 %v3617_v24, %v2319_v53  ;;  %2593 = vmatmul.bf16.vlgmr.msra.gmra.mxu0 %v2581_v27  ;;  %2619 = vmatmul.bf16.vlgmr.msra.gmra.mxu2 %v2581_v27 }
 0x331   : > { %3620 = vrsqrt.f32 %v2001_v63  ;;  %vm2370_vm5 = vcmp.eq.f32.partialorder %v2001_v63, inf  ;;  %v2373_v5 = vand.u32 2147483648, %v2001_v63  ;;  %vm2372_vm6 = vcmp.eq.f32.partialorder %v2001_v63, 0.0  ;;  %2632 = vmatmul.bf16.vlgmr.msra.gmra.mxu3 %v2582_v41 }
 0x332   : > { %v2299_v55 = vsel %vm2298_vm15, %v5339_v29, %v2297_v30  ;;  %v2321_v13 = vmul.f32 %v2320_v8, %v1997_v10 }
 0x333   : > { %v2302_v20 = vsel %vm2300_vm1, %v2301_v40, %v2299_v55  ;;  %v3619_v18 = vpop.eup %3618  ;;  %2474 = vmatpush.bf16.msra.mxu1 %v5353_v46 }
 0x334   : > { %2411 = vst [vmem:[%s4725_s15 + $0xc0] sm:$0xff] %v2302_v20  ;;  %v2340_v6 = vmul.f32 %v3619_v18, %v1999_v34  ;;  %v2323_v61 = vsel %vm2322_vm2, %v1997_v10, %v2321_v13 }
 0x335   : > { %v2326_v52 = vsel %vm2324_vm3, %v2325_v59, %v2323_v61 }
 0x336   : > { %v2341_v29 = vmul.f32 %v3619_v18, %v2340_v6  ;;  %2413 = vst [vmem:[%s4725_s15 + $0xd0] sm:$0xff] %v2326_v52 }
 0x337   : > { %v3621_v44 = vpop.eup %3620  ;;  %2475 = vmatpush.bf16.msra.mxu1 %v5317_v14 }
 0x338   : > { %v2342_v50 = vmul.f32 0.5, %v2341_v29  ;;  %v2364_v54 = vmul.f32 %v3621_v44, %v2001_v63 }
 0x33a   : > { %v2343_v32 = vsub.f32 1.5, %v2342_v50  ;;  %v2365_v11 = vmul.f32 %v3621_v44, %v2364_v54 }
 0x33b   : > { %2476 = vmatpush.bf16.msra.mxu1 %v5279_v23 }
 0x33c   : > { %v2344_v51 = vmul.f32 %v3619_v18, %v2343_v32  ;;  %v2366_v10 = vmul.f32 0.5, %v2365_v11 }
 0x33e   : > { %v2345_v17 = vmul.f32 %v2344_v51, %v1999_v34  ;;  %v2367_v57 = vsub.f32 1.5, %v2366_v10 }
 0x33f   : > { %2477 = vmatpush.bf16.msra.mxu1 %v5241_v22 }
 0x340   : > { %v2347_v0 = vsel %vm2346_vm0, %v1999_v34, %v2345_v17  ;;  %v2368_v26 = vmul.f32 %v3621_v44, %v2367_v57 }
 0x341   : > { %v2350_v48 = vsel %vm2348_vm4, %v2349_v37, %v2347_v0 }
 0x342   : > { %2415 = vst [vmem:[%s4725_s15 + $0xe0] sm:$0xff] %v2350_v48  ;;  %v2369_v3 = vmul.f32 %v2368_v26, %v2001_v63 }
 0x343   : > { %2478 = vmatpush.bf16.msra.mxu1 %v5201_v9  ;;  %v2508_v60 = vpop.f32.mrf.mxu3 }
 0x344   : > { %v2371_v49 = vsel %vm2370_vm5, %v2001_v63, %v2369_v3  ;;  %v2509_v34 = vadd.f32 %v2508_v60, %v2495_v16 }
 0x345   : > { %v2374_v36 = vsel %vm2372_vm6, %v2373_v5, %v2371_v49 }
 0x346   : > { %2417 = vst [vmem:[%s4725_s15 + $0xf0] sm:$0xff] %v2374_v36  ;;  %2514 = vrot.lane.b32.xlu2 %v2509_v34, %s3750_s10 }
 0x347   : > { %2479 = vmatpush.bf16.msra.mxu1 %v5156_v2 }
 0x34b   : > { %2480 = vmatpush.bf16.msra.mxu1 %v5127_v62  ;;  %v2469_v39 = vpop.f32.mrf.mxu0 }
 0x34e   : > { %2481 = vmatmul.bf16.vlgmr.msra.gmra.mxu1 %v4775_v12  ;;  %v3405_v12 = vld [vmem:[%s5537_s2 + $0xc] sm:$0xf] }
 0x34f   : > { %2538 = vmatpush.bf16.msrb.mxu1 %v5379_v35  ;;  %2649 = vst [vmem:[#allocation1] ss:$4 sm:$0xff] %v3405_v12 }
 0x353   : > { %2539 = vmatpush.bf16.msrb.mxu1 %v5353_v46  ;;  %v2471_v4 = vpop.f32.mrf.mxu0 }
 0x356   : > { %v2650_v21 = vld.sshfl [vmem:[#allocation1] sm:$0xff pattern:$0x73625140] }
 0x357   : > { %2540 = vmatpush.bf16.msrb.mxu1 %v5317_v14  ;;  %2662 = vmatmul.bf16.vlgmr.msrb.gmra.mxu0 %v2650_v21 }
 0x358   : > { %2688 = vmatmul.bf16.vlgmr.msrb.gmra.mxu2 %v2650_v21 }
 0x35b   : > { %2541 = vmatpush.bf16.msrb.mxu1 %v5279_v23 }
 0x35f   : > { %2542 = vmatpush.bf16.msrb.mxu1 %v5241_v22 }
 0x363   : > { %2543 = vmatpush.bf16.msrb.mxu1 %v5201_v9 }
 0x367   : > { %2544 = vmatpush.bf16.msrb.mxu1 %v5156_v2 }
 0x36b   : > { %2545 = vmatpush.bf16.msrb.mxu1 %v5127_v62  ;;  %v5425_v24 = vpop.f32.mrf.mxu0 }
 0x36e   : > { %2546 = vmatmul.bf16.vlgmr.msrb.gmra.mxu1 %v5183_v43  ;;  %v2651_v43 = vld.sshfl [vmem:[#allocation1 + $0x8] sm:$0xff pattern:$0x73625140] }
 0x36f   : > { %2598 = vmatpush.bf16.msra.mxu1 %v5379_v35  ;;  %2701 = vmatmul.bf16.vlgmr.msrb.gmra.mxu3 %v2651_v43 }
 0x373   : > { %2599 = vmatpush.bf16.msra.mxu1 %v5353_v46  ;;  %v2536_v1 = vpop.f32.mrf.mxu0 }
 0x377   : > { %2600 = vmatpush.bf16.msra.mxu1 %v5317_v14 }
 0x37b   : > { %2601 = vmatpush.bf16.msra.mxu1 %v5279_v23 }
 0x37f   : > { %2602 = vmatpush.bf16.msra.mxu1 %v5241_v22 }
 0x383   : > { %2603 = vmatpush.bf16.msra.mxu1 %v5201_v9 }
 0x387   : > { %2604 = vmatpush.bf16.msra.mxu1 %v5156_v2 }
 0x38b   : > { %2605 = vmatpush.bf16.msra.mxu1 %v5127_v62 }
 0x38e   : > { %2606 = vmatmul.bf16.vlgmr.msra.gmra.mxu1 %v2582_v41 }
 0x38f   : > { %2667 = vmatpush.bf16.msrb.mxu1 %v5379_v35 }
 0x393   : > { %2668 = vmatpush.bf16.msrb.mxu1 %v5353_v46  ;;  %v2497_v46 = vpop.f32.mrf.mxu2 }
 0x397   : > { %2669 = vmatpush.bf16.msrb.mxu1 %v5317_v14  ;;  %v2510_v14 = vpop.f32.mrf.mxu3 }
 0x39b   : > { %2670 = vmatpush.bf16.msrb.mxu1 %v5279_v23  ;;  %v5427_v23 = vpop.f32.mrf.mxu2 }
 0x39f   : > { %2671 = vmatpush.bf16.msrb.mxu1 %v5241_v22  ;;  %v5429_v22 = vpop.f32.mrf.mxu3 }
 0x3a3   : > { %2672 = vmatpush.bf16.msrb.mxu1 %v5201_v9  ;;  %v2562_v9 = vpop.f32.mrf.mxu2 }
 0x3a7   : > { %2673 = vmatpush.bf16.msrb.mxu1 %v5156_v2  ;;  %v2575_v56 = vpop.f32.mrf.mxu3 }
 0x3ab   : > { %2674 = vmatpush.bf16.msrb.mxu1 %v5127_v62 }
 0x3ad   : > { %v2594_v7 = vpop.f32.mrf.mxu0 }
 0x3ae   : > { %2675 = vmatmul.bf16.vlgmr.msrb.gmra.mxu1 %v2651_v43 }
 0x3b3   : > { %v2620_v62 = vpop.f32.mrf.mxu2 }
 0x3b4   : > { %v2633_v19 = vpop.f32.mrf.mxu3 }
 0x3b5   : > { %v2634_v25 = vadd.f32 %v2633_v19, %v2620_v62  ;;  %v2596_v40 = vpop.f32.mrf.mxu0 }
 0x3b7   : > { %2639 = vrot.lane.b32.xlu0 %v2634_v25, %s3751_s11 }
 0x3bb   : > { %v2622_v38 = vpop.f32.mrf.mxu2 }
 0x3bc   : > { %v2635_v47 = vpop.f32.mrf.mxu3 }
 0x3cb   : > { %v2482_v2 = vpop.f32.mrf.mxu1 }
 0x3cc   : > { %v2483_v42 = vadd.f32 %v2482_v2, %v2469_v39 }
 0x3ce   : > { %2512 = vrot.lane.b32.xlu1 %v2483_v42, %s3750_s10  ;;  %s5441_s10 = scalar_lea.sflag [#allocation5], %s2736_s13 }
 0x3d3   : > { %v2484_v30 = vpop.f32.mrf.mxu1 }
 0x3d4   : > { %v2663_v31 = vpop.f32.mrf.mxu0 }
 0x3db   : > { %v2689_v15 = vpop.f32.mrf.mxu2 }
 0x3dc   : > { %v2665_v20 = vpop.f32.mrf.mxu0 }
 0x3e3   : > { %v2691_v6 = vpop.f32.mrf.mxu2 }
 0x3eb   : > { %v5431_v33 = vpop.f32.mrf.mxu1 }
 0x3f2   : > { %v2702_v35 = vpop.f32.mrf.mxu3 }
 0x3f3   : > { %v2549_v55 = vpop.f32.mrf.mxu1  ;;  %v2703_v18 = vadd.f32 %v2702_v35, %v2689_v15 }
 0x3fa   : > { %v2704_v63 = vpop.f32.mrf.mxu3 }
 0x40b   : > { %v2607_v45 = vpop.f32.mrf.mxu1 }
 0x40c   : > { %v2608_v58 = vadd.f32 %v2607_v45, %v2594_v7 }
 0x40e   : > { %2637 = vrot.lane.b32.xlu2 %v2608_v58, %s3751_s11  ;;  %s3636_s11 = sshra.s32 %s2774_s20, 4  ;;  %s3637_s11 = int_to_ptr.hbm [resolvable:$true] %s3636_s11 }
 0x40f   : > { %s3638_s26 = scalar_lea.hbm %s3637_s11, 256  ;;  %p3643_p0 = scmp.lt.s32.totalorder %s3637_s11, %s5520_s5 }
 0x410   : > { %p3639_p11 = scmp.ne.s32.totalorder %s3637_s11, %s3638_s26  ;;  %p3644_p1 = scmp.lt.s32.totalorder %s3642_s14, %s3638_s26 }
 0x412   : > { %p3640_p12 = pnand %p3639_p11, %p3830_p5  ;;  %p3645_p2 = por %p3644_p1, %p3643_p0 }
 0x413   : > { %v2609_v53 = vpop.f32.mrf.mxu1 }
 0x414   : > { %p3641_p13 = pneg %p3640_p12 }
 0x416   : > { %2708 = vrot.lane.b32.xlu2 %v2703_v18, %s5528_s12  ;;  %p3646_p3 = pnand %p3645_p2, %p3641_p13 }
 0x42b   : > { %v2676_v8 = vpop.f32.mrf.mxu1 }
 0x42c   : > { %v2677_v29 = vadd.f32 %v2676_v8, %v2663_v31 }
 0x42d   : > { %3649 = shalt.err (!%p3646_p3)
}
 0x42e   : > { %s3753_s13 = smov 256   ;;  %s3754_s17 = smov 16  }
 0x42f   : > { %3486 = dma.vmem_to_hbm [thread:$0]  (%p3830_p5), %s2772_s19, 4096, %s2774_s20, %s5441_s10, %s3753_s13, %s3753_s13, %s3754_s17  }
 0x430   : > { %s2753_s12 = scalar_lea.hbm %s5519_s4, %s3482_s29  ;;  %s2754_s1 = sshll.u32 %s4364_s9, 4  ;;  %s2755_s1 = int_to_ptr.vmem [resolvable:$true] %s2754_s1 }
 0x431   : > { %s5612_s15 = smov 3   ;;  %s2756_s26 = sshll.u32 %s2753_s12, 4  ;;  %s2757_s26 = int_to_ptr.hbm [resolvable:$true] %s2756_s26 }
 0x432   : > { %2706 = vrot.lane.b32.xlu1 %v2677_v29, %s5612_s15  ;;  %s2732_s11 = scalar_lea.sflag [#allocation3], %s4348_s28  ;;  %s3664_s14 = sshra.s32 %s2757_s26, 4  ;;  %s3665_s14 = int_to_ptr.hbm [resolvable:$true] %s3664_s14 }
 0x433   : > { %s3666_s16 = scalar_lea.hbm %s3665_s14, 512  ;;  %s3670_s20 = scalar_lea.hbm %s5519_s4, 1024 }
 0x434   : > { %p3667_p4 = scmp.ne.s32.totalorder %s3665_s14, %s3666_s16  ;;  %p3671_p9 = scmp.lt.s32.totalorder %s3665_s14, %s5519_s4 }
 0x435   : > { %p3672_p10 = scmp.lt.s32.totalorder %s3670_s20, %s3666_s16 }
 0x436   : > { %p3668_p7 = pnand %p3667_p4, %p3830_p5 }
 0x437   : > { %p3673_p11 = por %p3672_p10, %p3671_p9 }
 0x438   : > { %p3669_p8 = pneg %p3668_p7 }
 0x43a   : > { %p3674_p12 = pnand %p3673_p11, %p3669_p8 }
 0x43c   : > { %3677 = shalt.err (!%p3674_p12)
}
 0x43d   : > { %3485 = dma.vmem_to_hbm [thread:$0]  (%p3830_p5), %s2755_s1, 8192, %s2757_s26, %s2732_s11, %s3753_s13, %s3753_s13, %s3754_s17   ;;  %v2678_v13 = vpop.f32.mrf.mxu1  ;;  %v2515_v50 = vpop.permute.xlu2 %2514  ;;  %v5613_v61 = vld [vmem:[#allocation9_spill] sm:$0xff]  ;;  %vm2727_vm10 = vcmask 1043456  }
 0x43e   : > { %v2715_v59 = vld [vmem:[%s5518_s3] sm:$0xff]  ;;  %vm2516_vm7 = vcmp.lt.s32.totalorder %v5613_v61, 1  ;;  %vm2641_vm8 = vcmp.lt.s32.totalorder %v5613_v61, 2  ;;  %v2640_v37 = vpop.permute.xlu0 %2639  ;;  %vm2710_vm9 = vcmp.lt.s32.totalorder %v5613_v61, 3  ;;  %s2920_s1 = sshll.u32 %s4348_s28, 3  ;;  %s3484_s2 = sshll.u32 %s3811_s25, 3 }
 0x43f   : > { %2717 = vst [vmem:[#allocation1] ss:$2 sm:$0xff] %v2715_v59  ;;  %s2787_s12 = scalar_lea.hbm %s5521_s6, %s3484_s2  ;;  %s262_s15 = scalar_lea.vmem [#allocation6], %s2920_s1 }
 0x440   : > { %v2513_v52 = vpop.permute.xlu1 %2512  ;;  %s2789_s26 = sshll.u32 %s262_s15, 4  ;;  %s2791_s11 = sshll.u32 %s2787_s12, 4  ;;  %s2790_s26 = int_to_ptr.vmem [resolvable:$true] %s2789_s26  ;;  %s2792_s11 = int_to_ptr.hbm [resolvable:$true] %s2791_s11 }
 0x441   : > { %v2517_v44 = vsel %vm2516_vm7, %v2513_v52, %v2515_v50  ;;  %v2518_v51 = vsel %vm2516_vm7, %v2515_v50, %v2513_v52  ;;  %s3692_s25 = sshra.s32 %s2792_s11, 4  ;;  %s3698_s19 = scalar_lea.hbm %s5521_s6, 16  ;;  %s3693_s25 = int_to_ptr.hbm [resolvable:$true] %s3692_s25 }
 0x442   : > { %v2535_v54 = vadd.f32 %v5425_v24, %v2518_v51  ;;  %v2561_v17 = vadd.f32 %v5427_v23, %v2517_v44  ;;  %s3694_s28 = scalar_lea.hbm %s3693_s25, 8  ;;  %p3699_p2 = scmp.lt.s32.totalorder %s3693_s25, %s5521_s6 }
 0x443   : > { %p3695_p13 = scmp.ne.s32.totalorder %s3693_s25, %s3694_s28  ;;  %p3700_p3 = scmp.lt.s32.totalorder %s3698_s19, %s3694_s28 }
 0x444   : > { %v2548_v48 = vadd.f32 %v5431_v33, %v2535_v54  ;;  %v2574_v10 = vadd.f32 %v5429_v22, %v2561_v17 }
 0x445   : > { %p3696_p0 = pnand %p3695_p13, %p3830_p5  ;;  %p3701_p4 = por %p3700_p3, %p3699_p2 }
 0x446   : > { %v2719_v5 = vld.sshfl [vmem:[#allocation1 + $0x8] sm:$0xff pattern:$0x75316420]  ;;  %v2718_v12 = vld.sshfl [vmem:[#allocation1] sm:$0xff pattern:$0x75316420] }
 0x447   : > { %p3697_p1 = pneg %p3696_p0 }
 0x449   : > { %p3702_p7 = pnand %p3701_p4, %p3697_p1 }
 0x468   : > { %v2638_v32 = vpop.permute.xlu2 %2637 }
 0x469   : > { %v2642_v11 = vsel %vm2641_vm8, %v2638_v32, %v2640_v37  ;;  %v2643_v0 = vsel %vm2641_vm8, %v2640_v37, %v2638_v32 }
 0x46a   : > { %v2644_v26 = vadd.f32 %v2643_v0, %v2548_v48  ;;  %v2645_v3 = vadd.f32 %v2642_v11, %v2574_v10 }
 0x470   : > { %v2709_v57 = vpop.permute.xlu2 %2708 }
 0x4a4   : > { %v2707_v28 = vpop.permute.xlu1 %2706 }
 0x4a5   : > { %v2711_v49 = vsel %vm2710_vm9, %v2707_v28, %v2709_v57  ;;  %v2712_v36 = vsel %vm2710_vm9, %v2709_v57, %v2707_v28 }
 0x4a6   : > { %v2713_v27 = vadd.f32 %v2712_v36, %v2644_v26  ;;  %v2714_v41 = vadd.f32 %v2711_v49, %v2645_v3 }
 0x4a8   : > { %v2723_v21 = vmul.f32 %v2719_v5, %v2714_v41  ;;  %v2722_v43 = vmul.f32 %v2718_v12, %v2713_v27 }
 0x4aa   : > { %v2726_v39 = vrot.slane %v2723_v21, 4 }
 0x4ac   : > { %v2728_v4 = vsel %vm2727_vm10, %v2722_v43, %v2726_v39 }
 0x4ad   : > { %2730 = vst [vmem:[%s262_s15] sm:$0xff] %v2728_v4 }
 0x4ae   : > { %3705 = shalt.err (!%p3702_p7)
}
 0x4af   : > { %3487 = dma.vmem_to_hbm [thread:$0]  (%p3830_p5), %s2790_s26, 128, %s2792_s11, %s5441_s10  }
 0x4b0 PF: > { %p3501_p8 = scmp.ge.s32.totalorder %s3744_s24, 2  ;;  %s2803_s29 = sand.u32 1, %s3732_s21  }
 0x4b1   : > { %s2804_s9 = scalar_lea.sflag [#allocation3], %s2803_s29 }
 0x4b2   : > { %p3492_p9 = pnand %p3501_p8, %p3834_p6 }
 0x4b4   : > { %p3493_p10 = pneg %p3492_p9 }
 0x4b6   : > { %3723 = dma.done.wait (%p3493_p10), %s2804_s9, 8192  }
 0x4b7   : > { %3725 = vsyncadd (%p3493_p10), %s2804_s9, 4294959104  ;;  %s5614_s0 = sadd.s32 4294967294, %s3744_s24  }
 0x4b8   : > { %s2813_s1 = sand.u32 1, %s5614_s0  }
 0x4b9   : > { %s2814_s2 = scalar_lea.sflag [#allocation5], %s2813_s1 }
 0x4ba   : > { %3727 = dma.done.wait (%p3493_p10), %s2814_s2, 4224  }
 0x4bb   : > { %3729 = vsyncadd (%p3493_p10), %s2814_s2, 4294963072  ;;  %p20_p5 = scmp.ge.s32.totalorder %s3815_s27, 4   ;;  %s5615_s21 = smov %s3736_s22 }
 0x4bc   : > { %s5616_s22 = smov %s3740_s23  ;;  %s5617_s23 = smov %s3828_s30 }
 0x4bd   : > { %s5618_s24 = smov %s3815_s27  ;;  %22 = sbr.rel (!%p20_p5) target bundleno = 9 (0x9), region = 109 }
 0x4c2   :  { %2830 = vsyncpa [#allocation3], 1 }
 0x4c3   :  { %2832 = vsyncpa [#allocation3 + $0x1], 1 }
 0x4c4   :  { %2833 = vsyncpa [#allocation5], 1 }
 0x4c5   :  { %2835 = vsyncpa [#allocation5 + $0x1], 1 }

</bundles_post_ra>
